<compile_context>
chip_gen: v6e
topology: v6e:2x2x1
jax: 0.10.0
libtpu: 0.0.40
codegen_flags: <defaults>
</compile_context>

<pallas_src>
import jax
import jax.numpy as jnp
from jax.experimental import pallas as pl
from jax.experimental.pallas import tpu as pltpu

H1, H2, H3 = 1024, 512, 300
H3P = 384                      # H3 zero-padded up to a multiple of 128

# Packed per-ensemble "tail" (f32):
#   [ b1 | b2 | b3(padded) | w4_row(padded) | b4 | 0... ]
OFF_B1 = 0
OFF_B2 = OFF_B1 + H1           # 1024
OFF_B3 = OFF_B2 + H2           # 1536
OFF_W4 = OFF_B3 + H3P          # 1920
OFF_B4 = OFF_W4 + H3P          # 2304
TAIL = 2432                    # next multiple of 128 >= 2305


def _critic_kernel(obs_ref, act_ref, w1_ref, w2a_ref, w2b_ref, w3_ref,
                   tail_ref, out_ref):
    # Activations are tiny (B=8 rows) -> cast to bf16 and feed bf16 weights
    # straight to the MXU; accumulate in f32, keep bias/ReLU epilogue in f32.
    obs = obs_ref[...].astype(jnp.bfloat16)               # [B, obs_in]
    act = act_ref[...].astype(jnp.bfloat16)               # [B, act_in]

    b1 = tail_ref[:, OFF_B1:OFF_B1 + H1]                  # [1, H1]
    h1 = jnp.maximum(
        jnp.dot(obs, w1_ref[...], preferred_element_type=jnp.float32) + b1,
        0.0)

    b2 = tail_ref[:, OFF_B2:OFF_B2 + H2]                  # [1, H2]
    h2 = jnp.maximum(
        jnp.dot(h1.astype(jnp.bfloat16), w2a_ref[...],
                preferred_element_type=jnp.float32)
        + jnp.dot(act, w2b_ref[...], preferred_element_type=jnp.float32)
        + b2, 0.0)

    b3 = tail_ref[:, OFF_B3:OFF_B3 + H3P]                 # [1, H3P]
    h3 = jnp.maximum(
        jnp.dot(h2.astype(jnp.bfloat16), w3_ref[...],
                preferred_element_type=jnp.float32) + b3, 0.0)

    # FC4 (N = 1): VPU multiply + lane reduce instead of an MXU pass.
    w4 = tail_ref[:, OFF_W4:OFF_W4 + H3P]                 # [1, H3P]
    b4 = tail_ref[:, OFF_B4:OFF_B4 + 1]                   # [1, 1]
    out_ref[...] = jnp.sum(h3 * w4, axis=-1, keepdims=True) + b4


def ensemble_critic_forward(obs, act, params, k=None):
    """Run the ensemble of critics.

    Returns a list of E arrays of shape [B, 1] (or a single array if k given),
    matching EnsembleCrt_MA.forward.
    """
    w1, w2a, w2b, w3, tail = params
    E = w1.shape[0]
    B = obs.shape[0]
    obs_in = obs.shape[1]
    act_in = act.shape[1]

    out = pl.pallas_call(
        _critic_kernel,
        out_shape=jax.ShapeDtypeStruct((E, B, 1), jnp.float32),
        grid_spec=pltpu.PrefetchScalarGridSpec(
            num_scalar_prefetch=0,
            grid=(E,),
            in_specs=[
                # Shared activations (same block every step -> no re-DMA).
                pl.BlockSpec((B, obs_in), lambda e: (0, 0)),            # obs
                pl.BlockSpec((B, act_in), lambda e: (0, 0)),            # act
                # Per-ensemble weights (leading E axis squeezed away).
                pl.BlockSpec((None, obs_in, H1), lambda e: (e, 0, 0)),  # W1
                pl.BlockSpec((None, H1, H2), lambda e: (e, 0, 0)),      # W2a
                pl.BlockSpec((None, act_in, H2), lambda e: (e, 0, 0)),  # W2b
                pl.BlockSpec((None, H2, H3P), lambda e: (e, 0, 0)),     # W3
                pl.BlockSpec((None, 1, TAIL), lambda e: (e, 0, 0)),     # tail
            ],
            out_specs=pl.BlockSpec((None, B, 1), lambda e: (e, 0, 0)),
        ),
        compiler_params=pltpu.CompilerParams(
            dimension_semantics=("parallel",)),
    )(obs, act, w1, w2a, w2b, w3, tail)

    outs = [out[e] for e in range(E)]
    return outs if k is None else outs[k]


def init_params(key, n_ensemble, obs_in, act_in):
    """Deterministic init mimicking nn.Linear default; weights stored bf16."""

    def linear(k, fan_in, fan_out):
        kw, kb = jax.random.split(k)
        bound = 1.0 / jnp.sqrt(fan_in)
        w = jax.random.uniform(kw, (fan_in, fan_out), jnp.float32, -bound, bound)
        b = jax.random.uniform(kb, (fan_out,), jnp.float32, -bound, bound)
        return w, b

    w1s, w2as, w2bs, w3s, tails = [], [], [], [], []
    for ke in jax.random.split(key, n_ensemble):
        k1, k2, k3, k4 = jax.random.split(ke, 4)
        w1, b1 = linear(k1, obs_in, H1)
        w2, b2 = linear(k2, H1 + act_in, H2)     # FC2 sees cat([h1, act])
        w3, b3 = linear(k3, H2, H3)
        w4, b4 = linear(k4, H3, 1)

        # Zero-pad H3 (300 -> 384): padded b3 = 0, padded W4 rows = 0, so the
        # extra lanes contribute exactly 0.
        w3p = jnp.pad(w3, ((0, 0), (0, H3P - H3)))
        b3p = jnp.pad(b3, (0, H3P - H3))
        w4p = jnp.pad(w4[:, 0], (0, H3P - H3))   # FC4 as a row vector

        tail = jnp.zeros((TAIL,), jnp.float32)
        tail = tail.at[OFF_B1:OFF_B1 + H1].set(b1)
        tail = tail.at[OFF_B2:OFF_B2 + H2].set(b2)
        tail = tail.at[OFF_B3:OFF_B3 + H3P].set(b3p)
        tail = tail.at[OFF_W4:OFF_W4 + H3P].set(w4p)
        tail = tail.at[OFF_B4].set(b4[0])

        w1s.append(w1.astype(jnp.bfloat16))
        w2as.append(w2[:H1].astype(jnp.bfloat16))
        w2bs.append(w2[H1:].astype(jnp.bfloat16))
        w3s.append(w3p.astype(jnp.bfloat16))
        tails.append(tail[None, :])              # biases stay f32

    stack = lambda xs: jnp.stack(xs, axis=0)
    return (stack(w1s), stack(w2as), stack(w2bs), stack(w3s), stack(tails))


def reference_forward(obs, act, params):
    """Pure-JAX f32 reference using the same (bf16-quantized) weights."""
    w1, w2a, w2b, w3, tail = params
    hp = jax.lax.Precision.HIGHEST
    outs = []
    for e in range(w1.shape[0]):
        W1 = w1[e].astype(jnp.float32)
        W2a = w2a[e].astype(jnp.float32)
        W2b = w2b[e].astype(jnp.float32)
        W3 = w3[e].astype(jnp.float32)
        t = tail[e, 0]
        bb1 = t[OFF_B1:OFF_B1 + H1]
        bb2 = t[OFF_B2:OFF_B2 + H2]
        bb3 = t[OFF_B3:OFF_B3 + H3P]
        w4r = t[OFF_W4:OFF_W4 + H3P]
        bb4 = t[OFF_B4]

        h1 = jax.nn.relu(jnp.dot(obs, W1, precision=hp) + bb1)
        h2 = jax.nn.relu(jnp.dot(h1, W2a, precision=hp)
                         + jnp.dot(act, W2b, precision=hp) + bb2)
        h3 = jax.nn.relu(jnp.dot(h2, W3, precision=hp) + bb3)
        outs.append(jnp.sum(h3 * w4r, axis=-1, keepdims=True) + bb4)
    return outs


if __name__ == "__main__":
    n_agent = 2
    obs_dim = 8
    act_dim = 4
    n_ensemble = 5
    B = 8

    obs_in = n_agent * obs_dim   # 16
    act_in = n_agent * act_dim   # 8

    key = jax.random.PRNGKey(0)
    kp, ko, ka = jax.random.split(key, 3)
    params = init_params(kp, n_ensemble, obs_in, act_in)
    obs = jax.random.normal(ko, (B, obs_in), jnp.float32)
    act = jax.random.normal(ka, (B, act_in), jnp.float32)

    outs = ensemble_critic_forward(obs, act, params)
    outs = [jax.block_until_ready(o) for o in outs]

    refs = reference_forward(obs, act, params)
    for o, r in zip(outs, refs):
        assert o.shape == (B, 1)
        # Tolerance accounts for bf16 activation quantization + MXU pass
        # differences (reference keeps activations f32).
        assert jnp.allclose(o, r, atol=1e-2, rtol=5e-2), (o, r)

    print("KERNEL_OK")
</pallas_src>

<mosaic_0001>
module attributes {stable_mosaic.version = 11 : i64} {
  func.func @_critic_kernel(%arg0: i32, %arg1: memref<8x16xf32, #tpu.memory_space<vmem>>, %arg2: memref<8x8xf32, #tpu.memory_space<vmem>>, %arg3: memref<1x16x1024xbf16, #tpu.memory_space<vmem>>, %arg4: memref<1x1024x512xbf16, #tpu.memory_space<vmem>>, %arg5: memref<1x8x512xbf16, #tpu.memory_space<vmem>>, %arg6: memref<1x512x384xbf16, #tpu.memory_space<vmem>>, %arg7: memref<1x1x2432xf32, #tpu.memory_space<vmem>>, %arg8: memref<1x8x1xf32, #tpu.memory_space<vmem>>) attributes {dimension_semantics = [#tpu.dimension_semantics<parallel>], iteration_bounds = array<i64: 5>, scalar_prefetch = 0 : i64, scratch_operands = 0 : i64, tpu.core_type = #tpu.core_type<tc>, window_params = [{pipeline_mode = #tpu.pipeline_mode<synchronous>, transform_indices = @transform_0, window_bounds = array<i64: 8, 16>}, {pipeline_mode = #tpu.pipeline_mode<synchronous>, transform_indices = @transform_1, window_bounds = array<i64: 8, 8>}, {transform_indices = @transform_2, window_bounds = array<i64: 1, 16, 1024>}, {transform_indices = @transform_3, window_bounds = array<i64: 1, 1024, 512>}, {transform_indices = @transform_4, window_bounds = array<i64: 1, 8, 512>}, {transform_indices = @transform_5, window_bounds = array<i64: 1, 512, 384>}, {transform_indices = @transform_6, window_bounds = array<i64: 1, 1, 2432>}, {transform_indices = @transform_7, window_bounds = array<i64: 1, 8, 1>}]} {
    %c0 = arith.constant 0 : index
    %c0_0 = arith.constant 0 : index
    %0 = vector.load %arg1[%c0, %c0_0] : memref<8x16xf32, #tpu.memory_space<vmem>>, vector<8x16xf32>
    %1 = arith.truncf %0 : vector<8x16xf32> to vector<8x16xbf16>
    %c0_1 = arith.constant 0 : index
    %c0_2 = arith.constant 0 : index
    %2 = vector.load %arg2[%c0_1, %c0_2] : memref<8x8xf32, #tpu.memory_space<vmem>>, vector<8x8xf32>
    %3 = arith.truncf %2 : vector<8x8xf32> to vector<8x8xbf16>
    %c0_3 = arith.constant 0 : index
    %c0_4 = arith.constant 0 : index
    %c0_5 = arith.constant 0 : index
    %4 = vector.load %arg7[%c0_3, %c0_4, %c0_5] : memref<1x1x2432xf32, #tpu.memory_space<vmem>>, vector<1x1x1024xf32>
    %5 = vector.shape_cast %4 : vector<1x1x1024xf32> to vector<1x1024xf32>
    %c0_6 = arith.constant 0 : index
    %c0_7 = arith.constant 0 : index
    %c0_8 = arith.constant 0 : index
    %6 = vector.load %arg3[%c0_6, %c0_7, %c0_8] : memref<1x16x1024xbf16, #tpu.memory_space<vmem>>, vector<1x16x1024xbf16>
    %7 = vector.shape_cast %6 : vector<1x16x1024xbf16> to vector<16x1024xbf16>
    %cst = arith.constant dense<0.000000e+00> : vector<8x1024xf32>
    %8 = tpu.matmul %1, %7, %cst {dimension_numbers = #tpu.dot_dimension_numbers<[1], [0], [0], [1], [0, 0, 1, 1], [], []>} : vector<8x16xbf16>, vector<16x1024xbf16>, vector<8x1024xf32> -> vector<8x1024xf32>
    %9 = vector.broadcast %5 : vector<1x1024xf32> to vector<8x1024xf32>
    %10 = arith.addf %8, %9 : vector<8x1024xf32>
    %cst_9 = arith.constant 0.000000e+00 : f32
    %11 = vector.broadcast %cst_9 : f32 to vector<8x1024xf32>
    %12 = arith.maximumf %10, %11 : vector<8x1024xf32>
    %c0_10 = arith.constant 0 : index
    %c0_11 = arith.constant 0 : index
    %c1024 = arith.constant 1024 : index
    %13 = vector.load %arg7[%c0_10, %c0_11, %c1024] : memref<1x1x2432xf32, #tpu.memory_space<vmem>>, vector<1x1x512xf32>
    %14 = vector.shape_cast %13 : vector<1x1x512xf32> to vector<1x512xf32>
    %15 = arith.truncf %12 : vector<8x1024xf32> to vector<8x1024xbf16>
    %c0_12 = arith.constant 0 : index
    %c0_13 = arith.constant 0 : index
    %c0_14 = arith.constant 0 : index
    %16 = vector.load %arg4[%c0_12, %c0_13, %c0_14] : memref<1x1024x512xbf16, #tpu.memory_space<vmem>>, vector<1x1024x512xbf16>
    %17 = vector.shape_cast %16 : vector<1x1024x512xbf16> to vector<1024x512xbf16>
    %cst_15 = arith.constant dense<0.000000e+00> : vector<8x512xf32>
    %18 = tpu.matmul %15, %17, %cst_15 {dimension_numbers = #tpu.dot_dimension_numbers<[1], [0], [0], [1], [0, 0, 1, 1], [], []>} : vector<8x1024xbf16>, vector<1024x512xbf16>, vector<8x512xf32> -> vector<8x512xf32>
    %c0_16 = arith.constant 0 : index
    %c0_17 = arith.constant 0 : index
    %c0_18 = arith.constant 0 : index
    %19 = vector.load %arg5[%c0_16, %c0_17, %c0_18] : memref<1x8x512xbf16, #tpu.memory_space<vmem>>, vector<1x8x512xbf16>
    %20 = vector.shape_cast %19 : vector<1x8x512xbf16> to vector<8x512xbf16>
    %cst_19 = arith.constant dense<0.000000e+00> : vector<8x512xf32>
    %21 = tpu.matmul %3, %20, %cst_19 {dimension_numbers = #tpu.dot_dimension_numbers<[1], [0], [0], [1], [0, 0, 1, 1], [], []>} : vector<8x8xbf16>, vector<8x512xbf16>, vector<8x512xf32> -> vector<8x512xf32>
    %22 = arith.addf %18, %21 : vector<8x512xf32>
    %23 = vector.broadcast %14 : vector<1x512xf32> to vector<8x512xf32>
    %24 = arith.addf %22, %23 : vector<8x512xf32>
    %cst_20 = arith.constant 0.000000e+00 : f32
    %25 = vector.broadcast %cst_20 : f32 to vector<8x512xf32>
    %26 = arith.maximumf %24, %25 : vector<8x512xf32>
    %c0_21 = arith.constant 0 : index
    %c0_22 = arith.constant 0 : index
    %c1536 = arith.constant 1536 : index
    %27 = vector.load %arg7[%c0_21, %c0_22, %c1536] : memref<1x1x2432xf32, #tpu.memory_space<vmem>>, vector<1x1x384xf32>
    %28 = vector.shape_cast %27 : vector<1x1x384xf32> to vector<1x384xf32>
    %29 = arith.truncf %26 : vector<8x512xf32> to vector<8x512xbf16>
    %c0_23 = arith.constant 0 : index
    %c0_24 = arith.constant 0 : index
    %c0_25 = arith.constant 0 : index
    %30 = vector.load %arg6[%c0_23, %c0_24, %c0_25] : memref<1x512x384xbf16, #tpu.memory_space<vmem>>, vector<1x512x384xbf16>
    %31 = vector.shape_cast %30 : vector<1x512x384xbf16> to vector<512x384xbf16>
    %cst_26 = arith.constant dense<0.000000e+00> : vector<8x384xf32>
    %32 = tpu.matmul %29, %31, %cst_26 {dimension_numbers = #tpu.dot_dimension_numbers<[1], [0], [0], [1], [0, 0, 1, 1], [], []>} : vector<8x512xbf16>, vector<512x384xbf16>, vector<8x384xf32> -> vector<8x384xf32>
    %33 = vector.broadcast %28 : vector<1x384xf32> to vector<8x384xf32>
    %34 = arith.addf %32, %33 : vector<8x384xf32>
    %cst_27 = arith.constant 0.000000e+00 : f32
    %35 = vector.broadcast %cst_27 : f32 to vector<8x384xf32>
    %36 = arith.maximumf %34, %35 : vector<8x384xf32>
    %c0_28 = arith.constant 0 : index
    %c0_29 = arith.constant 0 : index
    %c1920 = arith.constant 1920 : index
    %37 = vector.load %arg7[%c0_28, %c0_29, %c1920] : memref<1x1x2432xf32, #tpu.memory_space<vmem>>, vector<1x1x384xf32>
    %38 = vector.shape_cast %37 : vector<1x1x384xf32> to vector<1x384xf32>
    %c0_30 = arith.constant 0 : index
    %c0_31 = arith.constant 0 : index
    %c2304 = arith.constant 2304 : index
    %39 = vector.load %arg7[%c0_30, %c0_31, %c2304] : memref<1x1x2432xf32, #tpu.memory_space<vmem>>, vector<1x1x1xf32>
    %40 = vector.shape_cast %39 : vector<1x1x1xf32> to vector<1x1xf32>
    %41 = vector.broadcast %38 : vector<1x384xf32> to vector<8x384xf32>
    %42 = arith.mulf %36, %41 : vector<8x384xf32>
    %cst_32 = arith.constant dense<0.000000e+00> : vector<8xf32>
    %43 = vector.multi_reduction <add>, %42, %cst_32 [1] : vector<8x384xf32> to vector<8xf32>
    %44 = vector.shape_cast %43 : vector<8xf32> to vector<8x1xf32>
    %45 = vector.broadcast %40 : vector<1x1xf32> to vector<8x1xf32>
    %46 = arith.addf %44, %45 : vector<8x1xf32>
    %c0_33 = arith.constant 0 : index
    %c0_34 = arith.constant 0 : index
    %c0_35 = arith.constant 0 : index
    %47 = vector.load %arg8[%c0_33, %c0_34, %c0_35] : memref<1x8x1xf32, #tpu.memory_space<vmem>>, vector<1x8x1xf32>
    %48 = vector.shape_cast %47 : vector<1x8x1xf32> to vector<8x1xf32>
    %49 = vector.shape_cast %46 : vector<8x1xf32> to vector<1x8x1xf32>
    tpu.vector_store %arg8[%c0_33, %c0_34, %c0_35], %49 {strides = array<i32>} : memref<1x8x1xf32, #tpu.memory_space<vmem>>, vector<1x8x1xf32>,
    return
  }
  func.func @transform_0(%arg0: i32) -> (i32, i32) {
    %c0_i32 = arith.constant 0 : i32
    %c0_i32_0 = arith.constant 0 : i32
    %c0_i32_1 = arith.constant 0 : i32
    return %c0_i32, %c0_i32_0 : i32, i32
  }
  func.func @transform_1(%arg0: i32) -> (i32, i32) {
    %c0_i32 = arith.constant 0 : i32
    %c0_i32_0 = arith.constant 0 : i32
    %c0_i32_1 = arith.constant 0 : i32
    return %c0_i32, %c0_i32_0 : i32, i32
  }
  func.func @transform_2(%arg0: i32) -> (i32, i32, i32) {
    %c0_i32 = arith.constant 0 : i32
    %c0_i32_0 = arith.constant 0 : i32
    %c0_i32_1 = arith.constant 0 : i32
    return %arg0, %c0_i32, %c0_i32_0 : i32, i32, i32
  }
  func.func @transform_3(%arg0: i32) -> (i32, i32, i32) {
    %c0_i32 = arith.constant 0 : i32
    %c0_i32_0 = arith.constant 0 : i32
    %c0_i32_1 = arith.constant 0 : i32
    return %arg0, %c0_i32, %c0_i32_0 : i32, i32, i32
  }
  func.func @transform_4(%arg0: i32) -> (i32, i32, i32) {
    %c0_i32 = arith.constant 0 : i32
    %c0_i32_0 = arith.constant 0 : i32
    %c0_i32_1 = arith.constant 0 : i32
    return %arg0, %c0_i32, %c0_i32_0 : i32, i32, i32
  }
  func.func @transform_5(%arg0: i32) -> (i32, i32, i32) {
    %c0_i32 = arith.constant 0 : i32
    %c0_i32_0 = arith.constant 0 : i32
    %c0_i32_1 = arith.constant 0 : i32
    return %arg0, %c0_i32, %c0_i32_0 : i32, i32, i32
  }
  func.func @transform_6(%arg0: i32) -> (i32, i32, i32) {
    %c0_i32 = arith.constant 0 : i32
    %c0_i32_0 = arith.constant 0 : i32
    %c0_i32_1 = arith.constant 0 : i32
    return %arg0, %c0_i32, %c0_i32_0 : i32, i32, i32
  }
  func.func @transform_7(%arg0: i32) -> (i32, i32, i32) {
    %c0_i32 = arith.constant 0 : i32
    %c0_i32_0 = arith.constant 0 : i32
    %c0_i32_1 = arith.constant 0 : i32
    return %arg0, %c0_i32, %c0_i32_0 : i32, i32, i32
  }
}

</mosaic_0001>

<bundles_post_ra>
// kernel: tpu_custom_call.1
= control target key start
LH: loop header
LB: loop body
LE: loop exit
PB: predicated region body
PF: predicated region fallthrough
CT: control target
= control target key end

     0   :  { %s5862_s0 = inlined_call_operand.hbm [shape: f32[8,16], index: 0, kind: input, shape index: {}]   ;;  %s5863_s1 = inlined_call_operand.hbm [shape: f32[8,8], index: 1, kind: input, shape index: {}]   ;;  %s5864_s2 = inlined_call_operand.hbm [shape: bf16[5,16,1024], index: 2, kind: input, shape index: {}]   ;;  %s5865_s3 = inlined_call_operand.hbm [shape: bf16[5,1024,512], index: 3, kind: input, shape index: {}]   ;;  %s5866_s4 = inlined_call_operand.hbm [shape: bf16[5,8,512], index: 4, kind: input, shape index: {}]   ;;  %s5867_s5 = inlined_call_operand.hbm [shape: bf16[5,512,384], index: 5, kind: input, shape index: {}]   ;;  %s5868_s6 = inlined_call_operand.hbm [shape: f32[5,1,2432], index: 6, kind: input, shape index: {}]   ;;  %s5869_s7 = inlined_call_operand.vmem [shape: f32[5,8,1], index: 7, kind: output, shape index: {}]  }
   0x1   :  { %5876 = sst [smem:[#allocation15_spill]] %s5862_s0 }
   0x2   :  { %5877 = sst [smem:[#allocation16_spill]] %s5864_s2 }
   0x3   :  { %5878 = sst [smem:[#allocation17_spill]] %s5865_s3 }
   0x4   :  { %12 = vsyncpa [#allocation3], 0 }
   0x5   :  { %13 = vsyncpa [#allocation5], 0  ;;  %s5116_s24 = smov 0   ;;  %s5118_s25 = smov 0  }
   0x6   :  { %s5120_s26 = smov 0   ;;  %s5122_s27 = smov 0  }
   0x7 LB: > { %s5135_s28 = sadd.s32 4294967295, %s5060_s27   ;;  %s5138_s29 = sadd.s32 1, %s5060_s27   ;;  %s5060_s27 = sphi %s5122_s27, %s5901_s27   ;;  %s5056_s26 = sphi %s5120_s26, %s5900_s26   ;;  %s5052_s25 = sphi %s5118_s25, %s5899_s25   ;;  %s5048_s24 = sphi %s5116_s24, %s5898_s24  }
   0x8   : > { %s65_s30 = ssub.s32 %s5060_s27, %s5138_s29  ;;  %s68_s8 = sadd.s32 1, %s5056_s26 }
   0x9   : > { %p66_p0 = scmp.eq.s32.totalorder %s65_s30, 0  ;;  %p75_p1 = scmp.ne.s32.totalorder %s5056_s26, %s5052_s25 }
   0xa   : > { %p76_p2 = scmp.eq.s32.totalorder %s5060_s27, 0  ;;  %p81_p3 = scmp.ne.s32.totalorder %s5052_s25, %s5048_s24 }
   0xb   : > { %s5148_s9 = scalar_select %p66_p0, %s5056_s26, %s68_s8  }
   0xc   : > { %p5150_p4 = por %p76_p2, %p75_p1  ;;  %p5870_p5 = scmp.eq.s32.totalorder %s5135_s28, 0 }
   0xd   : > { %5879 = sst [smem:[#allocation14_spill]] %s5148_s9  ;;  %p3773_p6 = scmp.ge.s32.totalorder %s5060_s27, 1 }
   0xe   : > { %p222_p7 = scmp.lt.s32.totalorder %s5060_s27, 6  ;;  %p5159_p8 = por %p5870_p5, %p81_p3 }
   0xf   : > { %s5062_s13 = smov [#allocation2]   ;;  %p4266_p11 = scmp.lt.s32.totalorder %s5060_s27, 5 }
  0x10   : > { %s5881_s11 = scalar_select %p5159_p8, 1, 0 }
  0x11   : > { %p5163_p9 = pnand %p3773_p6, %p222_p7  ;;  %s235_s14 = sshll.u32 %s5062_s13, 4  ;;  %s236_s14 = int_to_ptr.vmem [resolvable:$true] %s235_s14 }
  0x12   : > { %s257_s15 = sand.u32 1, %s5060_s27   ;;  %p5179_p13 = pnand %p4266_p11, %p5150_p4 }
  0x13   : > { %s5882_s12 = scalar_select %p5163_p9, 1, 0 }
  0x14   : > { %p4241_p10 = pneg %p5163_p9  ;;  %s5184_s18 = sand.u32 1, %s5056_s26  }
  0x15   : > { %s3777_s19 = sshll.u32 %s5184_s18, 6  ;;  %s4837_s20 = scalar_lea.vmem %s236_s14, 128 }
  0x16   : > { %p5173_p12 = pnand %p4241_p10, %p5870_p5  ;;  %p4838_p1 = scmp.ne.s32.totalorder %s236_s14, %s4837_s20 }
  0x17   : > { %p4845_p6 = scmp.lt.s32.totalorder %s236_s14, %s236_s14  ;;  %p4846_p7 = scmp.lt.s32.totalorder %s4837_s20, %s4837_s20 }
  0x18   : > { %s5883_s16 = scalar_select %p5173_p12, 1, 0 }
  0x19   : > { %p5871_p0 = pneg %p5173_p12  ;;  %p4847_p10 = por %p4846_p7, %p4845_p6 }
  0x1b   : > { %p4840_p2 = pnand %p4838_p1, %p5871_p0 }
  0x1d   : > { %p4841_p3 = pneg %p4840_p2 }
  0x1f   : > { %p4848_p5 = pnand %p4847_p10, %p4841_p3 }
  0x21   : > { %4851 = shalt.err (!%p4848_p5)
}
  0x22   : > { %s5885_s0 = sld [smem:[#allocation15_spill]]  ;;  %s4170_s23 = sshll.u32 %s5060_s27, 10 }
  0x23   : > { %s261_s24 = scalar_lea.vmem [#allocation6], %s3777_s19  ;;  %s5886_s2 = sld [smem:[#allocation16_spill]] }
  0x24   : > { %s268_s30 = sshll.u32 %s261_s24, 4  ;;  %s5205_s20 = scalar_lea.sflag [#allocation3], %s257_s15  ;;  %s5203_s30 = int_to_ptr.vmem [resolvable:$true] %s268_s30 }
  0x25   : > { %p5211_p5 = pneg %p5179_p13 }
  0x28   : > { %4244 = dma.hbm_to_vmem [thread:$0]  (!%p5173_p12), %s5885_s0, 128, %s236_s14, [#allocation3]  }
  0x29   : > { %s5201_s13 = scalar_lea.hbm %s5886_s2, %s4170_s23  ;;  %s4857_s22 = scalar_lea.hbm %s5886_s2, 5120 }
  0x2a   : > { %s4852_s9 = scalar_lea.hbm %s5201_s13, 1024  ;;  %p4858_p2 = scmp.lt.s32.totalorder %s5201_s13, %s5886_s2 }
  0x2b   : > { %p4853_p4 = scmp.ne.s32.totalorder %s5201_s13, %s4852_s9  ;;  %p4859_p3 = scmp.lt.s32.totalorder %s4857_s22, %s4852_s9 }
  0x2d   : > { %p4855_p11 = pnand %p5211_p5, %p4853_p4  ;;  %p4860_p6 = por %p4859_p3, %p4858_p2 }
  0x2f   : > { %p4856_p1 = pneg %p4855_p11 }
  0x31   : > { %p4861_p7 = pnand %p4860_p6, %p4856_p1 }
  0x33   : > { %4864 = shalt.err (!%p4861_p7)
}
  0x34   : > { %s4865_s15 = scalar_lea.vmem %s5203_s30, 1024  ;;  %s5063_s8 = smov [#allocation6]  }
  0x35   : > { %p4866_p10 = scmp.ne.s32.totalorder %s5203_s30, %s4865_s15  ;;  %s4870_s10 = sshll.u32 %s5063_s8, 4  ;;  %s4871_s10 = int_to_ptr.vmem [resolvable:$false] %s4870_s10 }
  0x36   : > { %s4872_s19 = scalar_lea.vmem %s4871_s10, 2048  ;;  %p4873_p0 = scmp.lt.s32.totalorder %s5203_s30, %s4871_s10 }
  0x37   : > { %p4868_p4 = pnand %p4866_p10, %p5211_p5  ;;  %p4874_p8 = scmp.lt.s32.totalorder %s4872_s19, %s4865_s15 }
  0x39   : > { %p4869_p11 = pneg %p4868_p4  ;;  %p4875_p9 = por %p4874_p8, %p4873_p0 }
  0x3b   : > { %p4876_p12 = pnand %p4875_p9, %p4869_p11 }
  0x3d   : > { %4879 = shalt.err (!%p4876_p12)
}
  0x3e   : > { %s5064_s9 = smov 512   ;;  %s5065_s21 = smov 32  }
  0x3f   : > { %4251 = dma.hbm_to_vmem [thread:$0]  (!%p5179_p13), %s5201_s13, 1024, %s5203_s30, %s5205_s20, %s5064_s9, %s5064_s9, %s5065_s21  }
  0x40   : > { %s3780_s22 = sshll.u32 %s5184_s18, 11  ;;  %s4171_s23 = sshll.u32 %s5060_s27, 15 }
  0x41   : > { %s5888_s3 = sld [smem:[#allocation17_spill]]  ;;  %s282_s10 = scalar_lea.vmem [#allocation7], %s3780_s22 }
  0x42   : > { %s289_s19 = sshll.u32 %s282_s10, 4  ;;  %s5241_s19 = int_to_ptr.vmem [resolvable:$true] %s289_s19 }
  0x47   : > { %s5239_s15 = scalar_lea.hbm %s5888_s3, %s4171_s23  ;;  %s4885_s9 = scalar_lea.hbm %s5888_s3, 163840 }
  0x48   : > { %s4880_s0 = scalar_lea.hbm %s5239_s15, 32768  ;;  %p4886_p0 = scmp.lt.s32.totalorder %s5239_s15, %s5888_s3 }
  0x49   : > { %p4881_p8 = scmp.ne.s32.totalorder %s5239_s15, %s4880_s0  ;;  %p4887_p1 = scmp.lt.s32.totalorder %s4885_s9, %s4880_s0 }
  0x4b   : > { %p4883_p9 = pnand %p4881_p8, %p5211_p5  ;;  %p4888_p2 = por %p4887_p1, %p4886_p0 }
  0x4d   : > { %p4884_p12 = pneg %p4883_p9 }
  0x4f   : > { %p4889_p3 = pnand %p4888_p2, %p4884_p12 }
  0x51   : > { %4892 = shalt.err (!%p4889_p3)
}
  0x52   : > { %s4893_s22 = scalar_lea.vmem %s5241_s19, 32768  ;;  %s5066_s23 = smov [#allocation7]  }
  0x53   : > { %p4894_p6 = scmp.ne.s32.totalorder %s5241_s19, %s4893_s22  ;;  %s4898_s8 = sshll.u32 %s5066_s23, 4  ;;  %s4899_s8 = int_to_ptr.vmem [resolvable:$false] %s4898_s8 }
  0x54   : > { %s4900_s10 = scalar_lea.vmem %s4899_s8, 65536  ;;  %p4901_p4 = scmp.lt.s32.totalorder %s5241_s19, %s4899_s8 }
  0x55   : > { %p4896_p7 = pnand %p4894_p6, %p5211_p5  ;;  %p4902_p11 = scmp.lt.s32.totalorder %s4900_s10, %s4893_s22 }
  0x57   : > { %p4897_p10 = pneg %p4896_p7  ;;  %p4903_p8 = por %p4902_p11, %p4901_p4 }
  0x59   : > { %p4904_p9 = pnand %p4903_p8, %p4897_p10 }
  0x5b   : > { %4907 = shalt.err (!%p4904_p9)
}
  0x5c   : > { %s5067_s0 = smov 256   ;;  %s5068_s30 = smov 16  }
  0x5d   : > { %4254 = dma.hbm_to_vmem [thread:$0]  (!%p5179_p13), %s5239_s15, 32768, %s5241_s19, %s5205_s20, %s5067_s0, %s5067_s0, %s5068_s30  }
  0x5e   : > { %s3783_s13 = sshll.u32 %s5184_s18, 4  ;;  %s4172_s9 = sshll.u32 %s5060_s27, 8 }
  0x5f   : > { %s5269_s22 = scalar_lea.hbm %s5866_s4, %s4172_s9  ;;  %s303_s23 = scalar_lea.vmem [#allocation8], %s3783_s13 }
  0x60   : > { %s311_s8 = sshll.u32 %s303_s23, 4  ;;  %s4217_s10 = smul.u32 768, %s5184_s18  ;;  %s312_s8 = int_to_ptr.vmem [resolvable:$true] %s311_s8 }
  0x61   : > { %s4218_s2 = smul.u32 12288, %s5060_s27  ;;  %s4908_s3 = scalar_lea.hbm %s5269_s22, 256 }
  0x62   : > { %p4909_p12 = scmp.ne.s32.totalorder %s5269_s22, %s4908_s3  ;;  %s4913_s0 = scalar_lea.hbm %s5866_s4, 1280 }
  0x63   : > { %p4914_p2 = scmp.lt.s32.totalorder %s5269_s22, %s5866_s4  ;;  %p4915_p3 = scmp.lt.s32.totalorder %s4913_s0, %s4908_s3 }
  0x64   : > { %p4911_p0 = pnand %p4909_p12, %p5211_p5 }
  0x65   : > { %p4916_p6 = por %p4915_p3, %p4914_p2 }
  0x66   : > { %p4912_p1 = pneg %p4911_p0 }
  0x68   : > { %p4917_p7 = pnand %p4916_p6, %p4912_p1 }
  0x6a   : > { %4920 = shalt.err (!%p4917_p7)
}
  0x6b   : > { %s4921_s13 = scalar_lea.vmem %s312_s8, 256  ;;  %s5069_s21 = smov [#allocation8]  }
  0x6c   : > { %p4922_p10 = scmp.ne.s32.totalorder %s312_s8, %s4921_s13  ;;  %s4926_s24 = sshll.u32 %s5069_s21, 4  ;;  %s4927_s24 = int_to_ptr.vmem [resolvable:$false] %s4926_s24 }
  0x6d   : > { %s4928_s23 = scalar_lea.vmem %s4927_s24, 512  ;;  %p4929_p8 = scmp.lt.s32.totalorder %s312_s8, %s4927_s24 }
  0x6e   : > { %p4924_p4 = pnand %p4922_p10, %p5211_p5  ;;  %p4930_p9 = scmp.lt.s32.totalorder %s4928_s23, %s4921_s13 }
  0x70   : > { %p4925_p11 = pneg %p4924_p4  ;;  %p4931_p12 = por %p4930_p9, %p4929_p8 }
  0x72   : > { %p4932_p0 = pnand %p4931_p12, %p4925_p11 }
  0x74   : > { %4935 = shalt.err (!%p4932_p0)
}
  0x75   : > { %4257 = dma.hbm_to_vmem [thread:$0]  (!%p5179_p13), %s5269_s22, 256, %s312_s8, %s5205_s20  }
  0x76   : > { %s5293_s19 = scalar_lea.hbm %s5867_s5, %s4218_s2  ;;  %s322_s0 = scalar_lea.vmem [#allocation9], %s4217_s10 }
  0x77   : > { %s329_s30 = sshll.u32 %s322_s0, 4  ;;  %s4936_s9 = scalar_lea.hbm %s5293_s19, 12288  ;;  %s5295_s30 = int_to_ptr.vmem [resolvable:$true] %s329_s30 }
  0x78   : > { %p4937_p1 = scmp.ne.s32.totalorder %s5293_s19, %s4936_s9  ;;  %s4941_s22 = scalar_lea.hbm %s5867_s5, 61440 }
  0x79   : > { %p4942_p6 = scmp.lt.s32.totalorder %s5293_s19, %s5867_s5  ;;  %p4943_p7 = scmp.lt.s32.totalorder %s4941_s22, %s4936_s9 }
  0x7a   : > { %p4939_p2 = pnand %p4937_p1, %p5211_p5 }
  0x7b   : > { %p4944_p10 = por %p4943_p7, %p4942_p6 }
  0x7c   : > { %p4940_p3 = pneg %p4939_p2 }
  0x7e   : > { %p4945_p4 = pnand %p4944_p10, %p4940_p3 }
  0x80   : > { %4948 = shalt.err (!%p4945_p4)
}
  0x81   : > { %s4949_s2 = scalar_lea.vmem %s5295_s30, 12288  ;;  %s5070_s10 = smov [#allocation9]  }
  0x82   : > { %p4950_p11 = scmp.ne.s32.totalorder %s5295_s30, %s4949_s2  ;;  %s4954_s23 = sshll.u32 %s5070_s10, 4  ;;  %s4955_s23 = int_to_ptr.vmem [resolvable:$false] %s4954_s23 }
  0x83   : > { %s4956_s3 = scalar_lea.vmem %s4955_s23, 24576  ;;  %p4957_p12 = scmp.lt.s32.totalorder %s5295_s30, %s4955_s23 }
  0x84   : > { %p4952_p8 = pnand %p4950_p11, %p5211_p5  ;;  %p4958_p0 = scmp.lt.s32.totalorder %s4956_s3, %s4949_s2 }
  0x86   : > { %p4953_p9 = pneg %p4952_p8  ;;  %p4959_p1 = por %p4958_p0, %p4957_p12 }
  0x88   : > { %p4960_p2 = pnand %p4959_p1, %p4953_p9 }
  0x8a   : > { %4963 = shalt.err (!%p4960_p2)
}
  0x8b   : > { %s5071_s15 = smov 192   ;;  %s5072_s0 = smov 12  }
  0x8c   : > { %4260 = dma.hbm_to_vmem [thread:$0]  (!%p5179_p13), %s5293_s19, 12288, %s5295_s30, %s5205_s20, %s5071_s15, %s5071_s15, %s5072_s0  }
  0x8d   : > { %s4219_s9 = smul.u32 19, %s5184_s18  ;;  %s5073_s13 = smov [#allocation4]  }
  0x8e   : > { %s246_s21 = sshll.u32 %s5073_s13, 4  ;;  %s4220_s22 = smul.u32 304, %s5060_s27  ;;  %s247_s21 = int_to_ptr.vmem [resolvable:$true] %s246_s21 }
  0x8f   : > { %s4975_s8 = scalar_lea.vmem %s247_s21, 128  ;;  %p5889_p6 = scmp.ne.s32.totalorder %s5883_s16, 0 }
  0x90   : > { %p4976_p3 = scmp.ne.s32.totalorder %s247_s21, %s4975_s8  ;;  %p4983_p11 = scmp.lt.s32.totalorder %s247_s21, %s247_s21 }
  0x91   : > { %p5890_p7 = pneg %p5889_p6  ;;  %p4984_p8 = scmp.lt.s32.totalorder %s4975_s8, %s4975_s8 }
  0x93   : > { %p4978_p10 = pnand %p4976_p3, %p5890_p7  ;;  %p4985_p9 = por %p4984_p8, %p4983_p11 }
  0x95   : > { %p4979_p4 = pneg %p4978_p10 }
  0x97   : > { %p4986_p12 = pnand %p4985_p9, %p4979_p4 }
  0x99   : > { %4989 = shalt.err (!%p4986_p12)
}
  0x9a   : > { %4247 = dma.hbm_to_vmem [thread:$0]  (!%p5889_p6), %s5863_s1, 128, %s247_s21, [#allocation5]  }
  0x9b   : > { %s349_s30 = scalar_lea.hbm %s5868_s6, %s4220_s22  ;;  %s343_s2 = scalar_lea.vmem [#allocation10], %s4219_s9 }
  0x9c   : > { %s351_s10 = sshll.u32 %s343_s2, 4  ;;  %s4990_s23 = scalar_lea.hbm %s349_s30, 304  ;;  %s352_s10 = int_to_ptr.vmem [resolvable:$true] %s351_s10 }
  0x9d   : > { %p4991_p0 = scmp.ne.s32.totalorder %s349_s30, %s4990_s23  ;;  %s4995_s16 = scalar_lea.hbm %s5868_s6, 1520 }
  0x9e   : > { %p4996_p3 = scmp.lt.s32.totalorder %s349_s30, %s5868_s6  ;;  %p4997_p6 = scmp.lt.s32.totalorder %s4995_s16, %s4990_s23 }
  0x9f   : > { %p4993_p1 = pnand %p4991_p0, %p5211_p5 }
  0xa0   : > { %p4998_p7 = por %p4997_p6, %p4996_p3 }
  0xa1   : > { %p4994_p2 = pneg %p4993_p1 }
  0xa3   : > { %p4999_p10 = pnand %p4998_p7, %p4994_p2 }
  0xa5   : > { %5002 = shalt.err (!%p4999_p10)
}
  0xa6   : > { %s5003_s9 = scalar_lea.vmem %s352_s10, 304  ;;  %s5074_s21 = smov [#allocation10]  }
  0xa7   : > { %p5004_p4 = scmp.ne.s32.totalorder %s352_s10, %s5003_s9  ;;  %s5008_s22 = sshll.u32 %s5074_s21, 4  ;;  %s5009_s22 = int_to_ptr.vmem [resolvable:$false] %s5008_s22 }
  0xa8   : > { %s5010_s8 = scalar_lea.vmem %s5009_s22, 608  ;;  %p5011_p9 = scmp.lt.s32.totalorder %s352_s10, %s5009_s22 }
  0xa9   : > { %p5006_p11 = pnand %p5004_p4, %p5211_p5  ;;  %p5012_p12 = scmp.lt.s32.totalorder %s5010_s8, %s5003_s9 }
  0xab   : > { %p5007_p8 = pneg %p5006_p11  ;;  %p5013_p0 = por %p5012_p12, %p5011_p9 }
  0xad   : > { %p5014_p1 = pnand %p5013_p0, %p5007_p8 }
  0xaf   : > { %5017 = shalt.err (!%p5014_p1)
}
  0xb0   : > { %4263 = dma.hbm_to_vmem [thread:$0]  (!%p5179_p13), %s349_s30, 304, %s352_s10, %s5205_s20  }
  0xb1   : > { %p5891_p2 = scmp.ne.s32.totalorder %s5882_s12, 0 }
  0xb2   : > { %p5892_p3 = scmp.eq.s32.totalorder (!%p5891_p2), %s5135_s28, 0 }
  0xb3   : > { %360 = sbr.rel (%p5891_p2) target bundleno = 1179 (0x49b), region = 48 }
  0xb8   : > { %5035 = dma.done.wait (%p5892_p3), [#allocation3], 128   ;;  %p5893_p5 = pmov %p5892_p3 }
  0xb9   : > { %p5894_p6 = pmov %p5892_p3 }
  0xba   : > { %5037 = vsyncadd (%p5893_p5), [#allocation3], 4294967168 }
  0xbb   : > { %5039 = dma.done.wait (%p5894_p6), [#allocation5], 128   ;;  %p5895_p7 = pmov %p5892_p3 }
  0xbc   : > { %s370_s17 = sand.u32 1, %s5135_s28   ;;  %s5356_s20 = sand.u32 1, %s5052_s25  }
  0xbd   : > { %5041 = vsyncadd (%p5895_p7), [#allocation5], 4294967168  ;;  %s3791_s12 = sshll.u32 %s5356_s20, 6  ;;  %s371_s14 = scalar_lea.sflag [#allocation3], %s370_s17 }
  0xbe   : > { %s374_s24 = scalar_lea.vmem [#allocation6], %s3791_s12  ;;  %p5896_p13 = scmp.ne.s32.totalorder %s5881_s11, 0 }
  0xc0   : > { %5043 = dma.done.wait (%p5896_p13), %s371_s14, 46640  }
  0xc1   : > { %5045 = vsyncadd (%p5896_p13), %s371_s14, 4294920656  ;;  %v5075_v0 = vmov 0   ;;  %s3793_s19 = sshll.u32 %s5356_s20, 4  ;;  %v470_v1 = vld [vmem:[%s374_s24] sm:$0xff]  ;;  %v471_v3 = vld [vmem:[%s374_s24 + $0x8] sm:$0xff]  ;;  %s3792_s27 = sshll.u32 %s5356_s20, 11 }
  0xc2   : > { %595 = vmatprep.mubr.bf16.mxu0 %v5075_v0  ;;  %636 = vmatprep.mubr.bf16.mxu1 %v5075_v0  ;;  %v474_v2 = vld [vmem:[%s374_s24 + $0x20] sm:$0xff]  ;;  %v475_v5 = vld [vmem:[%s374_s24 + $0x28] sm:$0xff]  ;;  %v465_v7 = vld [vmem:[#allocation2] sm:$0xff]  ;;  %s392_s11 = scalar_lea.vmem [#allocation8], %s3793_s19  ;;  %vm559_vm0 = vcmask 130048   ;;  %s5365_s18 = scalar_lea.vmem [#allocation7], %s3792_s27 }
  0xc3   : > { %v3796_v4 = vcombine.high %v470_v1, %v474_v2  ;;  %v3795_v6 = vcombine.low %v470_v1, %v474_v2  ;;  %v472_v8 = vld [vmem:[%s374_s24 + $0x10] sm:$0xff]  ;;  %v3798_v9 = vcombine.high %v471_v3, %v475_v5  ;;  %v3797_v10 = vcombine.low %v471_v3, %v475_v5  ;;  %v473_v12 = vld [vmem:[%s374_s24 + $0x18] sm:$0xff]  ;;  %s4222_s30 = smul.u32 19, %s5356_s20  ;;  %p460_p10 = scmp.lt.s32.totalorder %s5135_s28, 4 }
  0xc4   : > { %v476_v11 = vld [vmem:[%s374_s24 + $0x30] sm:$0xff]  ;;  %v477_v13 = vld [vmem:[%s374_s24 + $0x38] sm:$0xff]  ;;  %v466_v14 = vpack.c.bf16 %v465_v7, %v465_v7  ;;  %vm1016_vm1 = vcmask 1043456   ;;  %vm1012_vm2 = vcmask 64512   ;;  %s4221_s10 = smul.u32 768, %s5356_s20  ;;  %vm3606_vm3 = vcmask 7168  }
  0xc5   : > { %577 = vmatprep.subr.bf16.mxu0 %v3796_v4  ;;  %v3800_v15 = vcombine.high %v472_v8, %v476_v11  ;;  %v3802_v16 = vcombine.high %v473_v12, %v477_v13  ;;  %v1000_v17 = vld [vmem:[%s392_s11] sm:$0xff]  ;;  %618 = vmatprep.subr.bf16.mxu1 %v3798_v9  ;;  %v3799_v18 = vcombine.low %v472_v8, %v476_v11  ;;  %v1001_v19 = vld [vmem:[%s392_s11 + $0x8] sm:$0xff]  ;;  %s5443_s2 = scalar_lea.vmem [#allocation10], %s4222_s30  ;;  %s5903_s28 = smov (!%p460_p10, %s5135_s28), 4 }
  0xc6   : > { %578 = vmatpush1.bf16.msra.mxu0 %v3795_v6  ;;  %619 = vmatpush1.bf16.msra.mxu1 %v3797_v10  ;;  %v3801_v20 = vcombine.low %v473_v12, %v477_v13  ;;  %v3808_v21 = vcombine.high %v1000_v17, %v1000_v17  ;;  %v3810_v22 = vcombine.high %v1001_v19, %v1001_v19  ;;  %v4316_v27 = vld [vmem:[%s5365_s18 + $0xe4] ss:$16 sps:$4 sm:$0xff]   ;;  %v467_v29 = vld [vmem:[#allocation4] sm:$0xff]  ;;  %v4314_v31 = vld [vmem:[%s5365_s18 + $0xe0] ss:$16 sps:$4 sm:$0xff]   ;;  %s5592_s23 = scalar_lea.vmem [#allocation9], %s4221_s10 }
  0xc7   : > { %659 = vmatprep.subr.bf16.mxu0 %v3800_v15  ;;  %700 = vmatprep.subr.bf16.mxu1 %v3802_v16  ;;  %v3807_v23 = vcombine.low %v1000_v17, %v1000_v17  ;;  %v3809_v24 = vcombine.low %v1001_v19, %v1001_v19  ;;  %v4319_v28 = vld [vmem:[%s5365_s18 + $0x2e4] ss:$16 sps:$4 sm:$0xff]   ;;  %v468_v30 = vpack.c.bf16 %v467_v29, %v467_v29  ;;  %v4317_v32 = vld [vmem:[%s5365_s18 + $0x2e0] ss:$16 sps:$4 sm:$0xff]   ;;  %s3794_s3 = sshll.u32 %s5903_s28, 3 }
  0xc8   : > { %v4322_v33 = vld [vmem:[%s5365_s18 + $0xc4] ss:$16 sps:$4 sm:$0xff]   ;;  %v4320_v35 = vld [vmem:[%s5365_s18 + $0xc0] ss:$16 sps:$4 sm:$0xff]   ;;  %s463_s0 = scalar_lea.vmem %s5869_s7, %s3794_s3 }
  0xc9   : > { %3803 = vmatmul.mubr.msk.bf16.vlgmr.msra.gmra.mxu0 %vm559_vm0, %v466_v14  ;;  %3804 = vmatmul.mubr.msk.bf16.vlgmr.msra.gmra.mxu1 %vm559_vm0, %v466_v14  ;;  %v1018_v25 = vsel %vm1016_vm1, %v3807_v23, 0  ;;  %v1024_v26 = vsel %vm1016_vm1, %v3809_v24, 0  ;;  %v4325_v34 = vld [vmem:[%s5365_s18 + $0x2c4] ss:$16 sps:$4 sm:$0xff]   ;;  %v4323_v36 = vld [vmem:[%s5365_s18 + $0x2c0] ss:$16 sps:$4 sm:$0xff]  }
  0xca   : > { %660 = vmatpush1.bf16.msra.mxu0 %v3799_v18  ;;  %677 = vmatprep.mubr.bf16.mxu0 %v5075_v0  ;;  %v4328_v37 = vld [vmem:[%s5365_s18 + $0xa4] ss:$16 sps:$4 sm:$0xff]   ;;  %v4326_v39 = vld [vmem:[%s5365_s18 + $0xa0] ss:$16 sps:$4 sm:$0xff]  }
  0xcb   : > { %701 = vmatpush1.bf16.msra.mxu1 %v3801_v20  ;;  %718 = vmatprep.mubr.bf16.mxu1 %v5075_v0  ;;  %v4331_v38 = vld [vmem:[%s5365_s18 + $0x2a4] ss:$16 sps:$4 sm:$0xff]   ;;  %v4329_v40 = vld [vmem:[%s5365_s18 + $0x2a0] ss:$16 sps:$4 sm:$0xff]  }
  0xcc   : > { %3811 = vmatprep.subr.msk.bf16.mxu0 %vm1016_vm1, %v3808_v21  ;;  %3813 = vmatprep.subr.msk.bf16.mxu1 %vm1016_vm1, %v3810_v22  ;;  %v4334_v41 = vld [vmem:[%s5365_s18 + $0x84] ss:$16 sps:$4 sm:$0xff]   ;;  %v4332_v43 = vld [vmem:[%s5365_s18 + $0x80] ss:$16 sps:$4 sm:$0xff]  }
  0xcd   : > { %v4337_v42 = vld [vmem:[%s5365_s18 + $0x284] ss:$16 sps:$4 sm:$0xff]   ;;  %v4335_v44 = vld [vmem:[%s5365_s18 + $0x280] ss:$16 sps:$4 sm:$0xff]  }
  0xce   : > { %v4340_v45 = vld [vmem:[%s5365_s18 + $0x64] ss:$16 sps:$4 sm:$0xff]   ;;  %v4338_v47 = vld [vmem:[%s5365_s18 + $0x60] ss:$16 sps:$4 sm:$0xff]  }
  0xcf   : > { %v4343_v46 = vld [vmem:[%s5365_s18 + $0x264] ss:$16 sps:$4 sm:$0xff]   ;;  %v4341_v48 = vld [vmem:[%s5365_s18 + $0x260] ss:$16 sps:$4 sm:$0xff]  }
  0xd0   : > { %v4346_v49 = vld [vmem:[%s5365_s18 + $0x44] ss:$16 sps:$4 sm:$0xff]   ;;  %v4344_v51 = vld [vmem:[%s5365_s18 + $0x40] ss:$16 sps:$4 sm:$0xff]  }
  0xd1   : > { %3805 = vmatmul.mubr.msk.bf16.vlgmr.msra.gmra.mxu0 %vm559_vm0, %v466_v14  ;;  %3806 = vmatmul.mubr.msk.bf16.vlgmr.msra.gmra.mxu1 %vm559_vm0, %v466_v14  ;;  %v4349_v50 = vld [vmem:[%s5365_s18 + $0x244] ss:$16 sps:$4 sm:$0xff]   ;;  %v4347_v52 = vld [vmem:[%s5365_s18 + $0x240] ss:$16 sps:$4 sm:$0xff]  }
  0xd2   : > { %1044 = vmatpush1.bf16.msra.mxu0 %v1018_v25  ;;  %1061 = vmatprep.mubr.bf16.mxu0 %v5075_v0  ;;  %v4352_v53 = vld [vmem:[%s5365_s18 + $0x24] ss:$16 sps:$4 sm:$0xff]   ;;  %v4350_v55 = vld [vmem:[%s5365_s18 + $0x20] ss:$16 sps:$4 sm:$0xff]  }
  0xd3   : > { %1085 = vmatpush1.bf16.msra.mxu1 %v1024_v26  ;;  %1102 = vmatprep.mubr.bf16.mxu1 %v5075_v0  ;;  %v4355_v54 = vld [vmem:[%s5365_s18 + $0x224] ss:$16 sps:$4 sm:$0xff]   ;;  %v4353_v56 = vld [vmem:[%s5365_s18 + $0x220] ss:$16 sps:$4 sm:$0xff]  }
  0xd4   : > { %2391 = vmatprep.subr.bf16.mxu0 %v4316_v27  ;;  %2432 = vmatprep.subr.bf16.mxu1 %v4319_v28  ;;  %v4358_v57 = vld [vmem:[%s5365_s18 + $0x4] ss:$16 sps:$4 sm:$0xff]   ;;  %v4356_v59 = vld [vmem:[%s5365_s18] ss:$16 sps:$4 sm:$0xff]  }
  0xd5   : > { %v4361_v58 = vld [vmem:[%s5365_s18 + $0x204] ss:$16 sps:$4 sm:$0xff]   ;;  %v4359_v60 = vld [vmem:[%s5365_s18 + $0x200] ss:$16 sps:$4 sm:$0xff]  }
  0xd6   : > { %v4364_v61 = vld [vmem:[%s5365_s18 + $0x1e4] ss:$16 sps:$4 sm:$0xff]   ;;  %v4362_v63 = vld [vmem:[%s5365_s18 + $0x1e0] ss:$16 sps:$4 sm:$0xff]  }
  0xd7   : > { %v4367_v62 = vld [vmem:[%s5365_s18 + $0x3e4] ss:$16 sps:$4 sm:$0xff]   ;;  %v4365_v0 = vld [vmem:[%s5365_s18 + $0x3e0] ss:$16 sps:$4 sm:$0xff]  }
  0xd8   : > { %v4370_v1 = vld [vmem:[%s5365_s18 + $0x1c4] ss:$16 sps:$4 sm:$0xff]   ;;  %v4368_v3 = vld [vmem:[%s5365_s18 + $0x1c0] ss:$16 sps:$4 sm:$0xff]  }
  0xd9   : > { %3812 = vmatmul.mubr.msk.bf16.vlgmr.msra.gmra.mxu0 %vm1012_vm2, %v468_v30  ;;  %3814 = vmatmul.mubr.msk.bf16.vlgmr.msra.gmra.mxu1 %vm1012_vm2, %v468_v30  ;;  %v4373_v2 = vld [vmem:[%s5365_s18 + $0x3c4] ss:$16 sps:$4 sm:$0xff]   ;;  %v4371_v4 = vld [vmem:[%s5365_s18 + $0x3c0] ss:$16 sps:$4 sm:$0xff]  }
  0xda   : > { %2392 = vmatpush1.bf16.msra.mxu0 %v4314_v31  ;;  %2433 = vmatpush1.bf16.msra.mxu1 %v4317_v32  ;;  %v4376_v5 = vld [vmem:[%s5365_s18 + $0x1a4] ss:$16 sps:$4 sm:$0xff]   ;;  %v4374_v7 = vld [vmem:[%s5365_s18 + $0x1a0] ss:$16 sps:$4 sm:$0xff]   ;;  %v479_v31 = vlaneseq }
  0xdb   : > { %2393 = vmatprep.subr.bf16.mxu0 %v4322_v33  ;;  %2434 = vmatprep.subr.bf16.mxu1 %v4325_v34  ;;  %v4379_v6 = vld [vmem:[%s5365_s18 + $0x3a4] ss:$16 sps:$4 sm:$0xff]   ;;  %v4377_v8 = vld [vmem:[%s5365_s18 + $0x3a0] ss:$16 sps:$4 sm:$0xff]  }
  0xdc   : > { %v4382_v9 = vld [vmem:[%s5365_s18 + $0x184] ss:$16 sps:$4 sm:$0xff]   ;;  %v4380_v11 = vld [vmem:[%s5365_s18 + $0x180] ss:$16 sps:$4 sm:$0xff]   ;;  %v5438_v32 = vshrl.u32 %v479_v31, 7 }
  0xdd   : > { %v4385_v10 = vld [vmem:[%s5365_s18 + $0x384] ss:$16 sps:$4 sm:$0xff]   ;;  %v4383_v12 = vld [vmem:[%s5365_s18 + $0x380] ss:$16 sps:$4 sm:$0xff]  }
  0xde   : > { %2394 = vmatpush1.bf16.msra.mxu0 %v4320_v35  ;;  %2435 = vmatpush1.bf16.msra.mxu1 %v4323_v36  ;;  %v4388_v13 = vld [vmem:[%s5365_s18 + $0x164] ss:$16 sps:$4 sm:$0xff]   ;;  %v4386_v15 = vld [vmem:[%s5365_s18 + $0x160] ss:$16 sps:$4 sm:$0xff]   ;;  %v5441_v33 = vsub.s32 0, %v5438_v32  ;;  %v5449_v35 = vsub.s32 2, %v5438_v32 }
  0xdf   : > { %2395 = vmatprep.subr.bf16.mxu0 %v4328_v37  ;;  %2436 = vmatprep.subr.bf16.mxu1 %v4331_v38  ;;  %v4391_v14 = vld [vmem:[%s5365_s18 + $0x364] ss:$16 sps:$4 sm:$0xff]   ;;  %v4389_v16 = vld [vmem:[%s5365_s18 + $0x360] ss:$16 sps:$4 sm:$0xff]   ;;  %v5452_v36 = vsub.s32 1, %v5438_v32  ;;  %v493_v37 = vsub.s32 3, %v5438_v32 }
  0xe0   : > { %v4394_v17 = vld [vmem:[%s5365_s18 + $0x144] ss:$16 sps:$4 sm:$0xff]   ;;  %v4392_v19 = vld [vmem:[%s5365_s18 + $0x140] ss:$16 sps:$4 sm:$0xff]  }
  0xe1   : > { %v4397_v18 = vld [vmem:[%s5365_s18 + $0x344] ss:$16 sps:$4 sm:$0xff]   ;;  %v4395_v20 = vld [vmem:[%s5365_s18 + $0x340] ss:$16 sps:$4 sm:$0xff]  }
  0xe2   : > { %2396 = vmatpush1.bf16.msra.mxu0 %v4326_v39  ;;  %2437 = vmatpush1.bf16.msra.mxu1 %v4329_v40  ;;  %v4400_v21 = vld [vmem:[%s5365_s18 + $0x124] ss:$16 sps:$4 sm:$0xff]   ;;  %v4398_v23 = vld [vmem:[%s5365_s18 + $0x120] ss:$16 sps:$4 sm:$0xff]  }
  0xe3   : > { %2397 = vmatprep.subr.bf16.mxu0 %v4334_v41  ;;  %2438 = vmatprep.subr.bf16.mxu1 %v4337_v42  ;;  %v4403_v22 = vld [vmem:[%s5365_s18 + $0x324] ss:$16 sps:$4 sm:$0xff]   ;;  %v4401_v24 = vld [vmem:[%s5365_s18 + $0x320] ss:$16 sps:$4 sm:$0xff]  }
  0xe4   : > { %v4406_v25 = vld [vmem:[%s5365_s18 + $0x104] ss:$16 sps:$4 sm:$0xff]   ;;  %v4404_v27 = vld [vmem:[%s5365_s18 + $0x100] ss:$16 sps:$4 sm:$0xff]  }
  0xe5   : > { %v4409_v26 = vld [vmem:[%s5365_s18 + $0x304] ss:$16 sps:$4 sm:$0xff]   ;;  %v4407_v28 = vld [vmem:[%s5365_s18 + $0x300] ss:$16 sps:$4 sm:$0xff]  }
  0xe6   : > { %2398 = vmatpush1.bf16.msra.mxu0 %v4332_v43  ;;  %2439 = vmatpush1.bf16.msra.mxu1 %v4335_v44  ;;  %v4412_v29 = vld [vmem:[%s5365_s18 + $0x4e4] ss:$16 sps:$4 sm:$0xff]   ;;  %v4428_v31 = vld [vmem:[%s5365_s18 + $0x480] ss:$16 sps:$4 sm:$0xff]  }
  0xe7   : > { %2399 = vmatprep.subr.bf16.mxu0 %v4340_v45  ;;  %2440 = vmatprep.subr.bf16.mxu1 %v4343_v46  ;;  %v4415_v30 = vld [vmem:[%s5365_s18 + $0x6e4] ss:$16 sps:$4 sm:$0xff]  }
  0xe8   : > { %v5446_v34 = vld [vmem:[%s5443_s2] sm:$0xff] }
  0xe9   : > { %v482_v38 = vrot.slane %v5446_v34, %v5441_v33  ;;  %v490_v39 = vrot.slane %v5446_v34, %v5449_v35  ;;  %v486_v40 = vrot.slane %v5446_v34, %v5452_v36  ;;  %v494_v42 = vrot.slane %v5446_v34, %v493_v37 }
  0xea   : > { %2400 = vmatpush1.bf16.msra.mxu0 %v4338_v47  ;;  %2441 = vmatpush1.bf16.msra.mxu1 %v4341_v48 }
  0xeb   : > { %2401 = vmatprep.subr.bf16.mxu0 %v4346_v49  ;;  %2442 = vmatprep.subr.bf16.mxu1 %v4349_v50  ;;  %v501_v49 = vsub.s32 5, %v5438_v32 }
  0xee   : > { %2402 = vmatpush1.bf16.msra.mxu0 %v4344_v51  ;;  %2443 = vmatpush1.bf16.msra.mxu1 %v4347_v52 }
  0xef   : > { %2403 = vmatprep.subr.bf16.mxu0 %v4352_v53  ;;  %2444 = vmatprep.subr.bf16.mxu1 %v4355_v54  ;;  %v509_v54 = vsub.s32 7, %v5438_v32 }
  0xf2   : > { %2404 = vmatpush1.bf16.msra.mxu0 %v4350_v55  ;;  %2445 = vmatpush1.bf16.msra.mxu1 %v4353_v56 }
  0xf3   : > { %2405 = vmatprep.subr.bf16.mxu0 %v4358_v57  ;;  %2446 = vmatprep.subr.bf16.mxu1 %v4361_v58 }
  0xf6   : > { %2406 = vmatpush1.bf16.msra.mxu0 %v4356_v59  ;;  %2447 = vmatpush1.bf16.msra.mxu1 %v4359_v60 }
  0xf7   : > { %2407 = vmatprep.subr.bf16.mxu0 %v4364_v61  ;;  %2448 = vmatprep.subr.bf16.mxu1 %v4367_v62  ;;  %v4410_v62 = vld [vmem:[%s5365_s18 + $0x4e0] ss:$16 sps:$4 sm:$0xff]  }
  0xfa   : > { %2408 = vmatpush2.bf16.msra.mxu0 %v4362_v63  ;;  %2449 = vmatpush2.bf16.msra.mxu1 %v4365_v0  ;;  %v502_v63 = vrot.slane %v5446_v34, %v501_v49  ;;  %v4445_v49 = vld [vmem:[%s5365_s18 + $0x644] ss:$16 sps:$4 sm:$0xff]  }
  0xfb   : > { %2409 = vmatprep.subr.bf16.mxu0 %v4370_v1  ;;  %2450 = vmatprep.subr.bf16.mxu1 %v4373_v2  ;;  %v4413_v2 = vld [vmem:[%s5365_s18 + $0x6e0] ss:$16 sps:$4 sm:$0xff]  }
  0xfe   : > { %2410 = vmatpush2.bf16.msra.mxu0 %v4368_v3  ;;  %2451 = vmatpush2.bf16.msra.mxu1 %v4371_v4  ;;  %v4418_v3 = vld [vmem:[%s5365_s18 + $0x4c4] ss:$16 sps:$4 sm:$0xff]  }
  0xff   : > { %2411 = vmatprep.subr.bf16.mxu0 %v4376_v5  ;;  %2452 = vmatprep.subr.bf16.mxu1 %v4379_v6  ;;  %v510_v5 = vrot.slane %v5446_v34, %v509_v54  ;;  %v4421_v6 = vld [vmem:[%s5365_s18 + $0x6c4] ss:$16 sps:$4 sm:$0xff]   ;;  %v4446_v54 = vld [vmem:[%s5365_s18 + $0x420] ss:$16 sps:$4 sm:$0xff]  }
 0x102   : > { %2412 = vmatpush2.bf16.msra.mxu0 %v4374_v7  ;;  %2453 = vmatpush2.bf16.msra.mxu1 %v4377_v8 }
 0x103   : > { %2413 = vmatprep.subr.bf16.mxu0 %v4382_v9  ;;  %2454 = vmatprep.subr.bf16.mxu1 %v4385_v10  ;;  %v4416_v9 = vld [vmem:[%s5365_s18 + $0x4c0] ss:$16 sps:$4 sm:$0xff]  }
 0x106   : > { %2414 = vmatpush2.bf16.msra.mxu0 %v4380_v11  ;;  %2455 = vmatpush2.bf16.msra.mxu1 %v4383_v12  ;;  %v4419_v12 = vld [vmem:[%s5365_s18 + $0x6c0] ss:$16 sps:$4 sm:$0xff]  }
 0x107   : > { %2415 = vmatprep.subr.bf16.mxu0 %v4388_v13  ;;  %2456 = vmatprep.subr.bf16.mxu1 %v4391_v14  ;;  %v4424_v13 = vld [vmem:[%s5365_s18 + $0x4a4] ss:$16 sps:$4 sm:$0xff]  }
 0x10a   : > { %2416 = vmatpush2.bf16.msra.mxu0 %v4386_v15  ;;  %2457 = vmatpush2.bf16.msra.mxu1 %v4389_v16  ;;  %v4427_v16 = vld [vmem:[%s5365_s18 + $0x6a4] ss:$16 sps:$4 sm:$0xff]  }
 0x10b   : > { %2417 = vmatprep.subr.bf16.mxu0 %v4394_v17  ;;  %2458 = vmatprep.subr.bf16.mxu1 %v4397_v18 }
 0x10e   : > { %2418 = vmatpush2.bf16.msra.mxu0 %v4392_v19  ;;  %2459 = vmatpush2.bf16.msra.mxu1 %v4395_v20 }
 0x10f   : > { %2419 = vmatprep.subr.bf16.mxu0 %v4400_v21  ;;  %2460 = vmatprep.subr.bf16.mxu1 %v4403_v22  ;;  %v4422_v21 = vld [vmem:[%s5365_s18 + $0x4a0] ss:$16 sps:$4 sm:$0xff]  }
 0x112   : > { %2420 = vmatpush2.bf16.msra.mxu0 %v4398_v23  ;;  %2461 = vmatpush2.bf16.msra.mxu1 %v4401_v24  ;;  %v4425_v24 = vld [vmem:[%s5365_s18 + $0x6a0] ss:$16 sps:$4 sm:$0xff]  }
 0x113   : > { %2421 = vmatprep.subr.bf16.mxu0 %v4406_v25  ;;  %2462 = vmatprep.subr.bf16.mxu1 %v4409_v26  ;;  %v4430_v25 = vld [vmem:[%s5365_s18 + $0x484] ss:$16 sps:$4 sm:$0xff]  }
 0x116   : > { %2422 = vmatpush2.bf16.msra.mxu0 %v4404_v27  ;;  %2463 = vmatpush2.bf16.msra.mxu1 %v4407_v28  ;;  %v4433_v28 = vld [vmem:[%s5365_s18 + $0x684] ss:$16 sps:$4 sm:$0xff]  }
 0x117   : > { %2473 = vmatprep.subr.bf16.mxu0 %v4412_v29  ;;  %2514 = vmatprep.subr.bf16.mxu1 %v4415_v30 }
 0x189   : > { %v597_v41 = vpop.f32.mrf.mxu0  ;;  %v638_v44 = vpop.f32.mrf.mxu1 }
 0x18a   : > { %v598_v43 = vadd.f32 %v597_v41, %v482_v38  ;;  %v639_v45 = vadd.f32 %v638_v44, %v490_v39  ;;  %v4431_v39 = vld [vmem:[%s5365_s18 + $0x680] ss:$16 sps:$4 sm:$0xff]  }
 0x18b   : > { %v599_v46 = vpop.f32.mrf.mxu0  ;;  %v640_v48 = vpop.f32.mrf.mxu1 }
 0x18c   : > { %v600_v47 = vadd.f32 %v599_v46, %v486_v40  ;;  %v727_v50 = vmax.f32 %v598_v43, 0.0  ;;  %v729_v51 = vmax.f32 %v639_v45, 0.0  ;;  %v641_v52 = vadd.f32 %v640_v48, %v494_v42  ;;  %v4436_v40 = vld [vmem:[%s5365_s18 + $0x464] ss:$16 sps:$4 sm:$0xff]   ;;  %v4434_v45 = vld [vmem:[%s5365_s18 + $0x460] ss:$16 sps:$4 sm:$0xff]  }
 0x18d   : > { %v601_v53 = vpop.f32.mrf.mxu0  ;;  %v642_v56 = vpop.f32.mrf.mxu1  ;;  %v4439_v42 = vld [vmem:[%s5365_s18 + $0x664] ss:$16 sps:$4 sm:$0xff]  }
 0x18e   : > { %v728_v55 = vmax.f32 %v600_v47, 0.0  ;;  %v730_v57 = vmax.f32 %v641_v52, 0.0  ;;  %v5466_v59 = vpack.c.bf16 %v729_v51, %v729_v51  ;;  %v5472_v0 = vpack.c.bf16 %v727_v50, %v727_v50  ;;  %v4437_v47 = vld [vmem:[%s5365_s18 + $0x660] ss:$16 sps:$4 sm:$0xff]   ;;  %v4442_v48 = vld [vmem:[%s5365_s18 + $0x444] ss:$16 sps:$4 sm:$0xff]  }
 0x18f   : > { %v602_v58 = vpop.f32.mrf.mxu0  ;;  %v643_v61 = vpop.f32.mrf.mxu1  ;;  %v4440_v50 = vld [vmem:[%s5365_s18 + $0x440] ss:$16 sps:$4 sm:$0xff]   ;;  %v4448_v52 = vld [vmem:[%s5365_s18 + $0x424] ss:$16 sps:$4 sm:$0xff]  }
 0x190   : > { %v5468_v60 = vpack.c.bf16 %v728_v55, %v728_v55  ;;  %v5474_v1 = vpack.c.bf16 %v730_v57, %v730_v57  ;;  %v4443_v51 = vld [vmem:[%s5365_s18 + $0x640] ss:$16 sps:$4 sm:$0xff]   ;;  %v4451_v53 = vld [vmem:[%s5365_s18 + $0x624] ss:$16 sps:$4 sm:$0xff]  }
 0x191   : > { %v5478_v4 = vpop.f32.mrf.mxu0  ;;  %v5483_v7 = vpop.f32.mrf.mxu1  ;;  %v4449_v55 = vld [vmem:[%s5365_s18 + $0x620] ss:$16 sps:$4 sm:$0xff]   ;;  %v4454_v56 = vld [vmem:[%s5365_s18 + $0x404] ss:$16 sps:$4 sm:$0xff]  }
 0x192   : > { %2423 = vmatprep.mubr.bf16.mxu0 %v5468_v60  ;;  %2464 = vmatprep.mubr.bf16.mxu1 %v5474_v1  ;;  %v4457_v57 = vld [vmem:[%s5365_s18 + $0x604] ss:$16 sps:$4 sm:$0xff]   ;;  %v4452_v58 = vld [vmem:[%s5365_s18 + $0x400] ss:$16 sps:$4 sm:$0xff]  }
 0x193   : > { %2424 = vmatmul.mubr.bf16.vlgmr.msra.gmra.mxu0 %v5472_v0  ;;  %v681_v8 = vpop.f32.mrf.mxu0  ;;  %2465 = vmatmul.mubr.bf16.vlgmr.msra.gmra.mxu1 %v5466_v59  ;;  %v722_v11 = vpop.f32.mrf.mxu1  ;;  %v4455_v61 = vld [vmem:[%s5365_s18 + $0x600] ss:$16 sps:$4 sm:$0xff]  }
 0x194   : > { %2474 = vmatpush1.bf16.msra.mxu0 %v4410_v62  ;;  %v682_v10 = vadd.f32 %v681_v8, %v502_v63  ;;  %2515 = vmatpush1.bf16.msra.mxu1 %v4413_v2  ;;  %v723_v15 = vadd.f32 %v722_v11, %v510_v5  ;;  %v4460_v62 = vld [vmem:[%s5365_s18 + $0x5e4] ss:$16 sps:$4 sm:$0xff]   ;;  %v4458_v2 = vld [vmem:[%s5365_s18 + $0x5e0] ss:$16 sps:$4 sm:$0xff]  }
 0x195   : > { %2475 = vmatprep.subr.bf16.mxu0 %v4418_v3  ;;  %v683_v14 = vpop.f32.mrf.mxu0  ;;  %2516 = vmatprep.subr.bf16.mxu1 %v4421_v6  ;;  %v724_v18 = vpop.f32.mrf.mxu1  ;;  %v4463_v63 = vld [vmem:[%s5365_s18 + $0x7e4] ss:$16 sps:$4 sm:$0xff]   ;;  %v4461_v3 = vld [vmem:[%s5365_s18 + $0x7e0] ss:$16 sps:$4 sm:$0xff]  }
 0x196   : > { %v732_v17 = vmax.f32 %v682_v10, 0.0  ;;  %v734_v19 = vmax.f32 %v723_v15, 0.0  ;;  %v4466_v5 = vld [vmem:[%s5365_s18 + $0x5c4] ss:$16 sps:$4 sm:$0xff]   ;;  %v4464_v8 = vld [vmem:[%s5365_s18 + $0x5c0] ss:$16 sps:$4 sm:$0xff]  }
 0x197   : > { %v684_v20 = vpop.f32.mrf.mxu0  ;;  %v725_v23 = vpop.f32.mrf.mxu1  ;;  %v4469_v6 = vld [vmem:[%s5365_s18 + $0x7c4] ss:$16 sps:$4 sm:$0xff]  }
 0x198   : > { %2476 = vmatpush1.bf16.msra.mxu0 %v4416_v9  ;;  %v5493_v22 = vpack.c.bf16 %v732_v17, %v732_v17  ;;  %2517 = vmatpush1.bf16.msra.mxu1 %v4419_v12  ;;  %v5497_v26 = vpack.c.bf16 %v734_v19, %v734_v19  ;;  %v4467_v9 = vld [vmem:[%s5365_s18 + $0x7c0] ss:$16 sps:$4 sm:$0xff]   ;;  %v4472_v10 = vld [vmem:[%s5365_s18 + $0x5a4] ss:$16 sps:$4 sm:$0xff]  }
 0x199   : > { %2477 = vmatprep.subr.bf16.mxu0 %v4424_v13  ;;  %v5499_v27 = vpop.f32.mrf.mxu0  ;;  %2518 = vmatprep.subr.bf16.mxu1 %v4427_v16  ;;  %v5503_v29 = vpop.f32.mrf.mxu1  ;;  %v4475_v11 = vld [vmem:[%s5365_s18 + $0x7a4] ss:$16 sps:$4 sm:$0xff]   ;;  %v4470_v12 = vld [vmem:[%s5365_s18 + $0x5a0] ss:$16 sps:$4 sm:$0xff]  }
 0x19a   : > { %2505 = vmatprep.mubr.bf16.mxu0 %v5493_v22  ;;  %2546 = vmatprep.mubr.bf16.mxu1 %v5497_v26  ;;  %v4473_v13 = vld [vmem:[%s5365_s18 + $0x7a0] ss:$16 sps:$4 sm:$0xff]   ;;  %v4478_v14 = vld [vmem:[%s5365_s18 + $0x584] ss:$16 sps:$4 sm:$0xff]  }
 0x19b   : > { %v5506_v30 = vpop.f32.mrf.mxu0  ;;  %v5509_v38 = vpop.f32.mrf.mxu1  ;;  %v4481_v15 = vld [vmem:[%s5365_s18 + $0x784] ss:$16 sps:$4 sm:$0xff]   ;;  %v4476_v16 = vld [vmem:[%s5365_s18 + $0x580] ss:$16 sps:$4 sm:$0xff]  }
 0x19c   : > { %2478 = vmatpush1.bf16.msra.mxu0 %v4422_v21  ;;  %2519 = vmatpush1.bf16.msra.mxu1 %v4425_v24  ;;  %v4479_v17 = vld [vmem:[%s5365_s18 + $0x780] ss:$16 sps:$4 sm:$0xff]   ;;  %v4484_v18 = vld [vmem:[%s5365_s18 + $0x564] ss:$16 sps:$4 sm:$0xff]   ;;  %v505_v21 = vsub.s32 6, %v5438_v32  ;;  %v497_v24 = vsub.s32 4, %v5438_v32 }
 0x19d   : > { %2479 = vmatprep.subr.bf16.mxu0 %v4430_v25  ;;  %v1067_v41 = vpop.f32.mrf.mxu0  ;;  %2520 = vmatprep.subr.bf16.mxu1 %v4433_v28  ;;  %v1108_v43 = vpop.f32.mrf.mxu1  ;;  %v4487_v19 = vld [vmem:[%s5365_s18 + $0x764] ss:$16 sps:$4 sm:$0xff]   ;;  %v4482_v20 = vld [vmem:[%s5365_s18 + $0x560] ss:$16 sps:$4 sm:$0xff]  }
 0x19e   : > { %v4485_v23 = vld [vmem:[%s5365_s18 + $0x760] ss:$16 sps:$4 sm:$0xff]   ;;  %v4490_v25 = vld [vmem:[%s5365_s18 + $0x544] ss:$16 sps:$4 sm:$0xff]  }
 0x19f   : > { %v1068_v44 = vpop.f32.mrf.mxu0  ;;  %v1109_v46 = vpop.f32.mrf.mxu1  ;;  %v4493_v28 = vld [vmem:[%s5365_s18 + $0x744] ss:$16 sps:$4 sm:$0xff]   ;;  %v4491_v41 = vld [vmem:[%s5365_s18 + $0x740] ss:$16 sps:$4 sm:$0xff]  }
 0x1a0   : > { %2480 = vmatpush1.bf16.msra.mxu0 %v4428_v31  ;;  %2521 = vmatpush1.bf16.msra.mxu1 %v4431_v39  ;;  %v506_v31 = vrot.slane %v5446_v34, %v505_v21  ;;  %v4488_v39 = vld [vmem:[%s5365_s18 + $0x540] ss:$16 sps:$4 sm:$0xff]   ;;  %v4499_v43 = vld [vmem:[%s5365_s18 + $0x724] ss:$16 sps:$4 sm:$0xff]   ;;  %v4550_v21 = vld [vmem:[%s5365_s18 + $0xc] ss:$16 sps:$4 sm:$0xff]  }
 0x1a1   : > { %2481 = vmatprep.subr.bf16.mxu0 %v4436_v40  ;;  %2522 = vmatprep.subr.bf16.mxu1 %v4439_v42  ;;  %v498_v40 = vrot.slane %v5446_v34, %v497_v24  ;;  %v4496_v42 = vld [vmem:[%s5365_s18 + $0x524] ss:$16 sps:$4 sm:$0xff]   ;;  %v4497_v34 = vld [vmem:[%s5365_s18 + $0x720] ss:$16 sps:$4 sm:$0xff]   ;;  %v4548_v24 = vld [vmem:[%s5365_s18 + $0x8] ss:$16 sps:$4 sm:$0xff]  }
 0x1a2   : > { %v721_v44 = vadd.f32 %v5483_v7, %v506_v31  ;;  %v4559_v31 = vld [vmem:[%s5365_s18 + $0x3ec] ss:$16 sps:$4 sm:$0xff]   ;;  %v4812_v32 = vld [vmem:[%s5592_s23 + $0x2d8] ss:$12 sps:$4 sm:$0xff]  }
 0x1a3   : > { %v680_v46 = vadd.f32 %v5478_v4, %v498_v40  ;;  %v4511_v4 = vld [vmem:[%s5365_s18 + $0x2ec] ss:$16 sps:$4 sm:$0xff]   ;;  %v4557_v40 = vld [vmem:[%s5365_s18 + $0x3e8] ss:$16 sps:$4 sm:$0xff]  }
 0x1a4   : > { %2482 = vmatpush1.bf16.msra.mxu0 %v4434_v45  ;;  %2523 = vmatpush1.bf16.msra.mxu1 %v4437_v47  ;;  %v4494_v45 = vld [vmem:[%s5365_s18 + $0x520] ss:$16 sps:$4 sm:$0xff]   ;;  %v4502_v47 = vld [vmem:[%s5365_s18 + $0x504] ss:$16 sps:$4 sm:$0xff]  }
 0x1a5   : > { %2483 = vmatprep.subr.bf16.mxu0 %v4442_v48  ;;  %2524 = vmatprep.subr.bf16.mxu1 %v4445_v49  ;;  %v4505_v48 = vld [vmem:[%s5365_s18 + $0x704] ss:$16 sps:$4 sm:$0xff]   ;;  %v733_v49 = vmax.f32 %v721_v44, 0.0  ;;  %v731_v7 = vmax.f32 %v680_v46, 0.0  ;;  %v4563_v44 = vld [vmem:[%s5365_s18 + $0x3c8] ss:$16 sps:$4 sm:$0xff]  }
 0x1a6   : > { %v4571_v46 = vld [vmem:[%s5365_s18 + $0x3ac] ss:$16 sps:$4 sm:$0xff]  }
 0x1a8   : > { %2484 = vmatpush1.bf16.msra.mxu0 %v4440_v50  ;;  %2525 = vmatpush1.bf16.msra.mxu1 %v4443_v51  ;;  %v4500_v50 = vld [vmem:[%s5365_s18 + $0x500] ss:$16 sps:$4 sm:$0xff]  }
 0x1a9   : > { %2485 = vmatprep.subr.bf16.mxu0 %v4448_v52  ;;  %2526 = vmatprep.subr.bf16.mxu1 %v4451_v53  ;;  %v4503_v51 = vld [vmem:[%s5365_s18 + $0x700] ss:$16 sps:$4 sm:$0xff]   ;;  %v4508_v52 = vld [vmem:[%s5365_s18 + $0xec] ss:$16 sps:$4 sm:$0xff]   ;;  %v5568_v53 = vpack.c.bf16 %v733_v49, %v733_v49 }
 0x1aa   : > { %v4577_v49 = vld [vmem:[%s5365_s18 + $0x38c] ss:$16 sps:$4 sm:$0xff]  }
 0x1ac   : > { %2486 = vmatpush1.bf16.msra.mxu0 %v4446_v54  ;;  %2527 = vmatpush1.bf16.msra.mxu1 %v4449_v55  ;;  %v4506_v54 = vld [vmem:[%s5365_s18 + $0xe8] ss:$16 sps:$4 sm:$0xff]   ;;  %v5571_v55 = vpack.c.bf16 %v731_v7, %v731_v7 }
 0x1ad   : > { %2487 = vmatprep.subr.bf16.mxu0 %v4454_v56  ;;  %2528 = vmatprep.subr.bf16.mxu1 %v4457_v57  ;;  %v4509_v56 = vld [vmem:[%s5365_s18 + $0x2e8] ss:$16 sps:$4 sm:$0xff]   ;;  %v4514_v57 = vld [vmem:[%s5365_s18 + $0xcc] ss:$16 sps:$4 sm:$0xff]  }
 0x1ae   : > { %v4575_v7 = vld [vmem:[%s5365_s18 + $0x388] ss:$16 sps:$4 sm:$0xff]  }
 0x1b0   : > { %2488 = vmatpush1.bf16.msra.mxu0 %v4452_v58  ;;  %2529 = vmatpush1.bf16.msra.mxu1 %v4455_v61  ;;  %v4517_v58 = vld [vmem:[%s5365_s18 + $0x2cc] ss:$16 sps:$4 sm:$0xff]   ;;  %v4512_v61 = vld [vmem:[%s5365_s18 + $0xc8] ss:$16 sps:$4 sm:$0xff]  }
 0x1b1   : > { %2489 = vmatprep.subr.bf16.mxu0 %v4460_v62  ;;  %2530 = vmatprep.subr.bf16.mxu1 %v4463_v63  ;;  %v4515_v62 = vld [vmem:[%s5365_s18 + $0x2c8] ss:$16 sps:$4 sm:$0xff]   ;;  %v4520_v63 = vld [vmem:[%s5365_s18 + $0xac] ss:$16 sps:$4 sm:$0xff]  }
 0x1b4   : > { %2490 = vmatpush2.bf16.msra.mxu0 %v4458_v2  ;;  %2531 = vmatpush2.bf16.msra.mxu1 %v4461_v3  ;;  %v4523_v2 = vld [vmem:[%s5365_s18 + $0x2ac] ss:$16 sps:$4 sm:$0xff]   ;;  %v4518_v3 = vld [vmem:[%s5365_s18 + $0xa8] ss:$16 sps:$4 sm:$0xff]  }
 0x1b5   : > { %2491 = vmatprep.subr.bf16.mxu0 %v4466_v5  ;;  %2532 = vmatprep.subr.bf16.mxu1 %v4469_v6  ;;  %v4521_v5 = vld [vmem:[%s5365_s18 + $0x2a8] ss:$16 sps:$4 sm:$0xff]   ;;  %v4529_v6 = vld [vmem:[%s5365_s18 + $0x28c] ss:$16 sps:$4 sm:$0xff]  }
 0x1b8   : > { %2492 = vmatpush2.bf16.msra.mxu0 %v4464_v8  ;;  %2533 = vmatpush2.bf16.msra.mxu1 %v4467_v9  ;;  %v4527_v8 = vld [vmem:[%s5365_s18 + $0x288] ss:$16 sps:$4 sm:$0xff]   ;;  %v4532_v9 = vld [vmem:[%s5365_s18 + $0x6c] ss:$16 sps:$4 sm:$0xff]  }
 0x1b9   : > { %2493 = vmatprep.subr.bf16.mxu0 %v4472_v10  ;;  %2534 = vmatprep.subr.bf16.mxu1 %v4475_v11  ;;  %v4535_v10 = vld [vmem:[%s5365_s18 + $0x26c] ss:$16 sps:$4 sm:$0xff]   ;;  %v4530_v11 = vld [vmem:[%s5365_s18 + $0x68] ss:$16 sps:$4 sm:$0xff]  }
 0x1bc   : > { %2494 = vmatpush2.bf16.msra.mxu0 %v4470_v12  ;;  %2535 = vmatpush2.bf16.msra.mxu1 %v4473_v13  ;;  %v4533_v12 = vld [vmem:[%s5365_s18 + $0x268] ss:$16 sps:$4 sm:$0xff]   ;;  %v4538_v13 = vld [vmem:[%s5365_s18 + $0x4c] ss:$16 sps:$4 sm:$0xff]  }
 0x1bd   : > { %2495 = vmatprep.subr.bf16.mxu0 %v4478_v14  ;;  %2536 = vmatprep.subr.bf16.mxu1 %v4481_v15  ;;  %v4541_v14 = vld [vmem:[%s5365_s18 + $0x24c] ss:$16 sps:$4 sm:$0xff]   ;;  %v4536_v15 = vld [vmem:[%s5365_s18 + $0x48] ss:$16 sps:$4 sm:$0xff]  }
 0x1c0   : > { %2496 = vmatpush2.bf16.msra.mxu0 %v4476_v16  ;;  %2537 = vmatpush2.bf16.msra.mxu1 %v4479_v17  ;;  %v4539_v16 = vld [vmem:[%s5365_s18 + $0x248] ss:$16 sps:$4 sm:$0xff]   ;;  %v4544_v17 = vld [vmem:[%s5365_s18 + $0x2c] ss:$16 sps:$4 sm:$0xff]  }
 0x1c1   : > { %2497 = vmatprep.subr.bf16.mxu0 %v4484_v18  ;;  %2538 = vmatprep.subr.bf16.mxu1 %v4487_v19  ;;  %v4547_v18 = vld [vmem:[%s5365_s18 + $0x22c] ss:$16 sps:$4 sm:$0xff]   ;;  %v4542_v19 = vld [vmem:[%s5365_s18 + $0x28] ss:$16 sps:$4 sm:$0xff]  }
 0x1c4   : > { %2498 = vmatpush2.bf16.msra.mxu0 %v4482_v20  ;;  %2539 = vmatpush2.bf16.msra.mxu1 %v4485_v23  ;;  %v4545_v20 = vld [vmem:[%s5365_s18 + $0x228] ss:$16 sps:$4 sm:$0xff]   ;;  %v4553_v23 = vld [vmem:[%s5365_s18 + $0x20c] ss:$16 sps:$4 sm:$0xff]  }
 0x1c5   : > { %2499 = vmatprep.subr.bf16.mxu0 %v4490_v25  ;;  %2540 = vmatprep.subr.bf16.mxu1 %v4493_v28  ;;  %v4551_v25 = vld [vmem:[%s5365_s18 + $0x208] ss:$16 sps:$4 sm:$0xff]   ;;  %v4556_v28 = vld [vmem:[%s5365_s18 + $0x1ec] ss:$16 sps:$4 sm:$0xff]  }
 0x1c8   : > { %2500 = vmatpush2.bf16.msra.mxu0 %v4488_v39  ;;  %2541 = vmatpush2.bf16.msra.mxu1 %v4491_v41  ;;  %v4554_v39 = vld [vmem:[%s5365_s18 + $0x1e8] ss:$16 sps:$4 sm:$0xff]   ;;  %v4562_v41 = vld [vmem:[%s5365_s18 + $0x1cc] ss:$16 sps:$4 sm:$0xff]  }
 0x1c9   : > { %2501 = vmatprep.subr.bf16.mxu0 %v4496_v42  ;;  %2542 = vmatprep.subr.bf16.mxu1 %v4499_v43  ;;  %v4565_v42 = vld [vmem:[%s5365_s18 + $0x3cc] ss:$16 sps:$4 sm:$0xff]   ;;  %v4560_v43 = vld [vmem:[%s5365_s18 + $0x1c8] ss:$16 sps:$4 sm:$0xff]  }
 0x1cc   : > { %2502 = vmatpush2.bf16.msra.mxu0 %v4494_v45  ;;  %2543 = vmatpush2.bf16.msra.mxu1 %v4497_v34  ;;  %v4568_v45 = vld [vmem:[%s5365_s18 + $0x1ac] ss:$16 sps:$4 sm:$0xff]   ;;  %v4566_v34 = vld [vmem:[%s5365_s18 + $0x1a8] ss:$16 sps:$4 sm:$0xff]  }
 0x1cd   : > { %2503 = vmatprep.subr.bf16.mxu0 %v4502_v47  ;;  %2544 = vmatprep.subr.bf16.mxu1 %v4505_v48  ;;  %v4569_v47 = vld [vmem:[%s5365_s18 + $0x3a8] ss:$16 sps:$4 sm:$0xff]   ;;  %v4574_v48 = vld [vmem:[%s5365_s18 + $0x18c] ss:$16 sps:$4 sm:$0xff]  }
 0x1d0   : > { %2504 = vmatpush2.bf16.msra.mxu0 %v4500_v50  ;;  %2545 = vmatpush2.bf16.msra.mxu1 %v4503_v51  ;;  %v4572_v50 = vld [vmem:[%s5365_s18 + $0x188] ss:$16 sps:$4 sm:$0xff]   ;;  %v4580_v51 = vld [vmem:[%s5365_s18 + $0x16c] ss:$16 sps:$4 sm:$0xff]  }
 0x1d1   : > { %2555 = vmatprep.subr.bf16.mxu0 %v4508_v52  ;;  %2596 = vmatprep.subr.bf16.mxu1 %v4511_v4  ;;  %v4583_v52 = vld [vmem:[%s5365_s18 + $0x36c] ss:$16 sps:$4 sm:$0xff]   ;;  %v4578_v4 = vld [vmem:[%s5365_s18 + $0x168] ss:$16 sps:$4 sm:$0xff]  }
 0x1d3   : > { %2506 = vmatmul.mubr.bf16.vlgmr.msra.gmra.mxu0 %v5571_v55  ;;  %2547 = vmatmul.mubr.bf16.vlgmr.msra.gmra.mxu1 %v5568_v53 }
 0x1d4   : > { %2556 = vmatpush1.bf16.msra.mxu0 %v4506_v54  ;;  %2587 = vmatprep.mubr.bf16.mxu0 %v5468_v60  ;;  %v4526_v60 = vld [vmem:[%s5365_s18 + $0x8c] ss:$16 sps:$4 sm:$0xff]   ;;  %v4581_v54 = vld [vmem:[%s5365_s18 + $0x368] ss:$16 sps:$4 sm:$0xff]  }
 0x1d5   : > { %2597 = vmatpush1.bf16.msra.mxu1 %v4509_v56  ;;  %2628 = vmatprep.mubr.bf16.mxu1 %v5474_v1  ;;  %v4524_v1 = vld [vmem:[%s5365_s18 + $0x88] ss:$16 sps:$4 sm:$0xff]   ;;  %v4586_v56 = vld [vmem:[%s5365_s18 + $0x14c] ss:$16 sps:$4 sm:$0xff]  }
 0x1d6   : > { %2557 = vmatprep.subr.bf16.mxu0 %v4514_v57  ;;  %2598 = vmatprep.subr.bf16.mxu1 %v4517_v58  ;;  %v4589_v57 = vld [vmem:[%s5365_s18 + $0x34c] ss:$16 sps:$4 sm:$0xff]   ;;  %v4584_v58 = vld [vmem:[%s5365_s18 + $0x148] ss:$16 sps:$4 sm:$0xff]  }
 0x1d8   : > { %2558 = vmatpush1.bf16.msra.mxu0 %v4512_v61  ;;  %v4587_v61 = vld [vmem:[%s5365_s18 + $0x348] ss:$16 sps:$4 sm:$0xff]  }
 0x1d9   : > { %2599 = vmatpush1.bf16.msra.mxu1 %v4515_v62  ;;  %2559 = vmatprep.subr.bf16.mxu0 %v4520_v63  ;;  %v4592_v62 = vld [vmem:[%s5365_s18 + $0x12c] ss:$16 sps:$4 sm:$0xff]  }
 0x1da   : > { %2600 = vmatprep.subr.bf16.mxu1 %v4523_v2  ;;  %v4595_v63 = vld [vmem:[%s5365_s18 + $0x32c] ss:$16 sps:$4 sm:$0xff]   ;;  %v4590_v2 = vld [vmem:[%s5365_s18 + $0x128] ss:$16 sps:$4 sm:$0xff]  }
 0x1dc   : > { %2560 = vmatpush1.bf16.msra.mxu0 %v4518_v3  ;;  %v4593_v3 = vld [vmem:[%s5365_s18 + $0x328] ss:$16 sps:$4 sm:$0xff]  }
 0x1dd   : > { %2601 = vmatpush1.bf16.msra.mxu1 %v4521_v5  ;;  %2561 = vmatprep.subr.bf16.mxu0 %v4526_v60  ;;  %v4598_v5 = vld [vmem:[%s5365_s18 + $0x10c] ss:$16 sps:$4 sm:$0xff]  }
 0x1de   : > { %2602 = vmatprep.subr.bf16.mxu1 %v4529_v6  ;;  %v4601_v60 = vld [vmem:[%s5365_s18 + $0x30c] ss:$16 sps:$4 sm:$0xff]   ;;  %v4596_v6 = vld [vmem:[%s5365_s18 + $0x108] ss:$16 sps:$4 sm:$0xff]  }
 0x1e0   : > { %2562 = vmatpush1.bf16.msra.mxu0 %v4524_v1  ;;  %v4599_v1 = vld [vmem:[%s5365_s18 + $0x308] ss:$16 sps:$4 sm:$0xff]  }
 0x1e1   : > { %2603 = vmatpush1.bf16.msra.mxu1 %v4527_v8  ;;  %2563 = vmatprep.subr.bf16.mxu0 %v4532_v9  ;;  %v4604_v8 = vld [vmem:[%s5365_s18 + $0x4ec] ss:$16 sps:$4 sm:$0xff]  }
 0x1e2   : > { %2604 = vmatprep.subr.bf16.mxu1 %v4535_v10  ;;  %v4607_v9 = vld [vmem:[%s5365_s18 + $0x6ec] ss:$16 sps:$4 sm:$0xff]   ;;  %v4602_v10 = vld [vmem:[%s5365_s18 + $0x4e8] ss:$16 sps:$4 sm:$0xff]  }
 0x1e4   : > { %2564 = vmatpush1.bf16.msra.mxu0 %v4530_v11  ;;  %v4605_v11 = vld [vmem:[%s5365_s18 + $0x6e8] ss:$16 sps:$4 sm:$0xff]  }
 0x1e5   : > { %2605 = vmatpush1.bf16.msra.mxu1 %v4533_v12  ;;  %2565 = vmatprep.subr.bf16.mxu0 %v4538_v13  ;;  %v4610_v12 = vld [vmem:[%s5365_s18 + $0x4cc] ss:$16 sps:$4 sm:$0xff]  }
 0x1e6   : > { %2606 = vmatprep.subr.bf16.mxu1 %v4541_v14  ;;  %v4613_v13 = vld [vmem:[%s5365_s18 + $0x6cc] ss:$16 sps:$4 sm:$0xff]   ;;  %v4608_v14 = vld [vmem:[%s5365_s18 + $0x4c8] ss:$16 sps:$4 sm:$0xff]  }
 0x1e8   : > { %2566 = vmatpush1.bf16.msra.mxu0 %v4536_v15  ;;  %v4611_v15 = vld [vmem:[%s5365_s18 + $0x6c8] ss:$16 sps:$4 sm:$0xff]  }
 0x1e9   : > { %2607 = vmatpush1.bf16.msra.mxu1 %v4539_v16  ;;  %2567 = vmatprep.subr.bf16.mxu0 %v4544_v17  ;;  %v4616_v16 = vld [vmem:[%s5365_s18 + $0x4ac] ss:$16 sps:$4 sm:$0xff]   ;;  %v4617_v17 = vld [vmem:[%s5365_s18 + $0x6a8] ss:$16 sps:$4 sm:$0xff]  }
 0x1ea   : > { %2608 = vmatprep.subr.bf16.mxu1 %v4547_v18  ;;  %v4625_v18 = vld [vmem:[%s5365_s18 + $0x68c] ss:$16 sps:$4 sm:$0xff]  }
 0x1ec   : > { %2568 = vmatpush1.bf16.msra.mxu0 %v4542_v19  ;;  %v4623_v19 = vld [vmem:[%s5365_s18 + $0x688] ss:$16 sps:$4 sm:$0xff]  }
 0x1ed   : > { %2609 = vmatpush1.bf16.msra.mxu1 %v4545_v20  ;;  %2569 = vmatprep.subr.bf16.mxu0 %v4550_v21  ;;  %v4628_v20 = vld [vmem:[%s5365_s18 + $0x46c] ss:$16 sps:$4 sm:$0xff]  }
 0x1ee   : > { %2610 = vmatprep.subr.bf16.mxu1 %v4553_v23  ;;  %v4631_v21 = vld [vmem:[%s5365_s18 + $0x66c] ss:$16 sps:$4 sm:$0xff]   ;;  %v4626_v23 = vld [vmem:[%s5365_s18 + $0x468] ss:$16 sps:$4 sm:$0xff]  }
 0x1f0   : > { %2570 = vmatpush1.bf16.msra.mxu0 %v4548_v24  ;;  %v4629_v24 = vld [vmem:[%s5365_s18 + $0x668] ss:$16 sps:$4 sm:$0xff]  }
 0x1f1   : > { %2611 = vmatpush1.bf16.msra.mxu1 %v4551_v25  ;;  %2571 = vmatprep.subr.bf16.mxu0 %v4556_v28  ;;  %v4634_v25 = vld [vmem:[%s5365_s18 + $0x44c] ss:$16 sps:$4 sm:$0xff]  }
 0x1f2   : > { %2612 = vmatprep.subr.bf16.mxu1 %v4559_v31  ;;  %v4637_v28 = vld [vmem:[%s5365_s18 + $0x64c] ss:$16 sps:$4 sm:$0xff]   ;;  %v4632_v31 = vld [vmem:[%s5365_s18 + $0x448] ss:$16 sps:$4 sm:$0xff]  }
 0x1f4   : > { %2572 = vmatpush2.bf16.msra.mxu0 %v4554_v39  ;;  %v4635_v39 = vld [vmem:[%s5365_s18 + $0x648] ss:$16 sps:$4 sm:$0xff]  }
 0x1f5   : > { %2613 = vmatpush2.bf16.msra.mxu1 %v4557_v40  ;;  %2573 = vmatprep.subr.bf16.mxu0 %v4562_v41  ;;  %v4640_v40 = vld [vmem:[%s5365_s18 + $0x42c] ss:$16 sps:$4 sm:$0xff]  }
 0x1f6   : > { %2614 = vmatprep.subr.bf16.mxu1 %v4565_v42  ;;  %v4643_v41 = vld [vmem:[%s5365_s18 + $0x62c] ss:$16 sps:$4 sm:$0xff]   ;;  %v4638_v42 = vld [vmem:[%s5365_s18 + $0x428] ss:$16 sps:$4 sm:$0xff]  }
 0x1f8   : > { %2574 = vmatpush2.bf16.msra.mxu0 %v4560_v43  ;;  %v4641_v43 = vld [vmem:[%s5365_s18 + $0x628] ss:$16 sps:$4 sm:$0xff]  }
 0x1f9   : > { %2615 = vmatpush2.bf16.msra.mxu1 %v4563_v44  ;;  %2575 = vmatprep.subr.bf16.mxu0 %v4568_v45  ;;  %v4646_v44 = vld [vmem:[%s5365_s18 + $0x40c] ss:$16 sps:$4 sm:$0xff]  }
 0x1fa   : > { %2616 = vmatprep.subr.bf16.mxu1 %v4571_v46  ;;  %v4649_v45 = vld [vmem:[%s5365_s18 + $0x60c] ss:$16 sps:$4 sm:$0xff]   ;;  %v4644_v46 = vld [vmem:[%s5365_s18 + $0x408] ss:$16 sps:$4 sm:$0xff]  }
 0x1fc   : > { %2576 = vmatpush2.bf16.msra.mxu0 %v4566_v34  ;;  %v4647_v34 = vld [vmem:[%s5365_s18 + $0x608] ss:$16 sps:$4 sm:$0xff]  }
 0x1fd   : > { %2617 = vmatpush2.bf16.msra.mxu1 %v4569_v47  ;;  %2577 = vmatprep.subr.bf16.mxu0 %v4574_v48  ;;  %v4652_v47 = vld [vmem:[%s5365_s18 + $0x5ec] ss:$16 sps:$4 sm:$0xff]  }
 0x1fe   : > { %2618 = vmatprep.subr.bf16.mxu1 %v4577_v49  ;;  %v4655_v48 = vld [vmem:[%s5365_s18 + $0x7ec] ss:$16 sps:$4 sm:$0xff]   ;;  %v4650_v49 = vld [vmem:[%s5365_s18 + $0x5e8] ss:$16 sps:$4 sm:$0xff]  }
 0x200   : > { %2578 = vmatpush2.bf16.msra.mxu0 %v4572_v50  ;;  %v4653_v50 = vld [vmem:[%s5365_s18 + $0x7e8] ss:$16 sps:$4 sm:$0xff]  }
 0x201   : > { %2619 = vmatpush2.bf16.msra.mxu1 %v4575_v7  ;;  %2579 = vmatprep.subr.bf16.mxu0 %v4580_v51  ;;  %v4658_v7 = vld [vmem:[%s5365_s18 + $0x5cc] ss:$16 sps:$4 sm:$0xff]  }
 0x202   : > { %2620 = vmatprep.subr.bf16.mxu1 %v4583_v52  ;;  %v4661_v51 = vld [vmem:[%s5365_s18 + $0x7cc] ss:$16 sps:$4 sm:$0xff]   ;;  %v4656_v52 = vld [vmem:[%s5365_s18 + $0x5c8] ss:$16 sps:$4 sm:$0xff]  }
 0x204   : > { %2580 = vmatpush2.bf16.msra.mxu0 %v4578_v4  ;;  %v4659_v4 = vld [vmem:[%s5365_s18 + $0x7c8] ss:$16 sps:$4 sm:$0xff]  }
 0x205   : > { %2621 = vmatpush2.bf16.msra.mxu1 %v4581_v54  ;;  %2581 = vmatprep.subr.bf16.mxu0 %v4586_v56  ;;  %v4664_v54 = vld [vmem:[%s5365_s18 + $0x5ac] ss:$16 sps:$4 sm:$0xff]  }
 0x206   : > { %2622 = vmatprep.subr.bf16.mxu1 %v4589_v57  ;;  %v4667_v56 = vld [vmem:[%s5365_s18 + $0x7ac] ss:$16 sps:$4 sm:$0xff]   ;;  %v4662_v57 = vld [vmem:[%s5365_s18 + $0x5a8] ss:$16 sps:$4 sm:$0xff]  }
 0x208   : > { %2582 = vmatpush2.bf16.msra.mxu0 %v4584_v58  ;;  %v4665_v58 = vld [vmem:[%s5365_s18 + $0x7a8] ss:$16 sps:$4 sm:$0xff]  }
 0x209   : > { %2623 = vmatpush2.bf16.msra.mxu1 %v4587_v61  ;;  %2583 = vmatprep.subr.bf16.mxu0 %v4592_v62  ;;  %v4670_v61 = vld [vmem:[%s5365_s18 + $0x58c] ss:$16 sps:$4 sm:$0xff]  }
 0x20a   : > { %2624 = vmatprep.subr.bf16.mxu1 %v4595_v63  ;;  %v4673_v62 = vld [vmem:[%s5365_s18 + $0x78c] ss:$16 sps:$4 sm:$0xff]   ;;  %v4668_v63 = vld [vmem:[%s5365_s18 + $0x588] ss:$16 sps:$4 sm:$0xff]  }
 0x20c   : > { %2584 = vmatpush2.bf16.msra.mxu0 %v4590_v2  ;;  %v4671_v2 = vld [vmem:[%s5365_s18 + $0x788] ss:$16 sps:$4 sm:$0xff]  }
 0x20d   : > { %2625 = vmatpush2.bf16.msra.mxu1 %v4593_v3  ;;  %2585 = vmatprep.subr.bf16.mxu0 %v4598_v5  ;;  %v4676_v3 = vld [vmem:[%s5365_s18 + $0x56c] ss:$16 sps:$4 sm:$0xff]  }
 0x20e   : > { %2626 = vmatprep.subr.bf16.mxu1 %v4601_v60  ;;  %v4679_v5 = vld [vmem:[%s5365_s18 + $0x76c] ss:$16 sps:$4 sm:$0xff]   ;;  %v4674_v60 = vld [vmem:[%s5365_s18 + $0x568] ss:$16 sps:$4 sm:$0xff]  }
 0x210   : > { %2586 = vmatpush2.bf16.msra.mxu0 %v4596_v6  ;;  %v4677_v6 = vld [vmem:[%s5365_s18 + $0x768] ss:$16 sps:$4 sm:$0xff]  }
 0x211   : > { %2627 = vmatpush2.bf16.msra.mxu1 %v4599_v1  ;;  %2637 = vmatprep.subr.bf16.mxu0 %v4604_v8  ;;  %v4682_v1 = vld [vmem:[%s5365_s18 + $0x54c] ss:$16 sps:$4 sm:$0xff]  }
 0x212   : > { %2678 = vmatprep.subr.bf16.mxu1 %v4607_v9  ;;  %v4685_v8 = vld [vmem:[%s5365_s18 + $0x74c] ss:$16 sps:$4 sm:$0xff]   ;;  %v4680_v9 = vld [vmem:[%s5365_s18 + $0x548] ss:$16 sps:$4 sm:$0xff]  }
 0x213   : > { %2588 = vmatmul.mubr.bf16.vlgmr.msra.gmra.mxu0 %v5472_v0  ;;  %v4619_v0 = vld [vmem:[%s5365_s18 + $0x6ac] ss:$16 sps:$4 sm:$0xff]  }
 0x214   : > { %2629 = vmatmul.mubr.bf16.vlgmr.msra.gmra.mxu1 %v5466_v59  ;;  %2638 = vmatpush1.bf16.msra.mxu0 %v4602_v10  ;;  %v4614_v59 = vld [vmem:[%s5365_s18 + $0x4a8] ss:$16 sps:$4 sm:$0xff]  }
 0x215   : > { %2669 = vmatprep.mubr.bf16.mxu0 %v5493_v22  ;;  %2679 = vmatpush1.bf16.msra.mxu1 %v4605_v11  ;;  %v4622_v22 = vld [vmem:[%s5365_s18 + $0x48c] ss:$16 sps:$4 sm:$0xff]   ;;  %v4683_v10 = vld [vmem:[%s5365_s18 + $0x748] ss:$16 sps:$4 sm:$0xff]  }
 0x216   : > { %2710 = vmatprep.mubr.bf16.mxu1 %v5497_v26  ;;  %2639 = vmatprep.subr.bf16.mxu0 %v4610_v12  ;;  %v4620_v26 = vld [vmem:[%s5365_s18 + $0x488] ss:$16 sps:$4 sm:$0xff]   ;;  %v4688_v11 = vld [vmem:[%s5365_s18 + $0x52c] ss:$16 sps:$4 sm:$0xff]  }
 0x217   : > { %2680 = vmatprep.subr.bf16.mxu1 %v4613_v13  ;;  %v4691_v12 = vld [vmem:[%s5365_s18 + $0x72c] ss:$16 sps:$4 sm:$0xff]   ;;  %v4686_v13 = vld [vmem:[%s5365_s18 + $0x528] ss:$16 sps:$4 sm:$0xff]  }
 0x218   : > { %2640 = vmatpush1.bf16.msra.mxu0 %v4608_v14  ;;  %v4689_v14 = vld [vmem:[%s5365_s18 + $0x728] ss:$16 sps:$4 sm:$0xff]  }
 0x219   : > { %2681 = vmatpush1.bf16.msra.mxu1 %v4611_v15  ;;  %2641 = vmatprep.subr.bf16.mxu0 %v4616_v16  ;;  %v4694_v15 = vld [vmem:[%s5365_s18 + $0x50c] ss:$16 sps:$4 sm:$0xff]  }
 0x21a   : > { %2682 = vmatprep.subr.bf16.mxu1 %v4619_v0  ;;  %v4697_v16 = vld [vmem:[%s5365_s18 + $0x70c] ss:$16 sps:$4 sm:$0xff]   ;;  %v4692_v0 = vld [vmem:[%s5365_s18 + $0x508] ss:$16 sps:$4 sm:$0xff]  }
 0x21c   : > { %2642 = vmatpush1.bf16.msra.mxu0 %v4614_v59  ;;  %v4695_v59 = vld [vmem:[%s5365_s18 + $0x708] ss:$16 sps:$4 sm:$0xff]  }
 0x21d   : > { %2683 = vmatpush1.bf16.msra.mxu1 %v4617_v17  ;;  %2643 = vmatprep.subr.bf16.mxu0 %v4622_v22  ;;  %v4700_v17 = vld [vmem:[%s5592_s23 + $0xac] ss:$12 sps:$4 sm:$0xff]   ;;  %v4698_v22 = vld [vmem:[%s5592_s23 + $0xa8] ss:$12 sps:$4 sm:$0xff]  }
 0x21e   : > { %2684 = vmatprep.subr.bf16.mxu1 %v4625_v18  ;;  %v4703_v18 = vld [vmem:[%s5592_s23 + $0x94] ss:$12 sps:$4 sm:$0xff]  }
 0x220   : > { %2644 = vmatpush1.bf16.msra.mxu0 %v4620_v26 }
 0x221   : > { %2685 = vmatpush1.bf16.msra.mxu1 %v4623_v19  ;;  %2645 = vmatprep.subr.bf16.mxu0 %v4628_v20  ;;  %v4701_v20 = vld [vmem:[%s5592_s23 + $0x90] ss:$12 sps:$4 sm:$0xff]  }
 0x222   : > { %2686 = vmatprep.subr.bf16.mxu1 %v4631_v21 }
 0x224   : > { %2646 = vmatpush1.bf16.msra.mxu0 %v4626_v23  ;;  %v4706_v23 = vld [vmem:[%s5592_s23 + $0x7c] ss:$12 sps:$4 sm:$0xff]  }
 0x225   : > { %2687 = vmatpush1.bf16.msra.mxu1 %v4629_v24  ;;  %2647 = vmatprep.subr.bf16.mxu0 %v4634_v25 }
 0x226   : > { %2688 = vmatprep.subr.bf16.mxu1 %v4637_v28 }
 0x228   : > { %2648 = vmatpush1.bf16.msra.mxu0 %v4632_v31  ;;  %v4709_v31 = vld [vmem:[%s5592_s23 + $0x64] ss:$12 sps:$4 sm:$0xff]  }
 0x229   : > { %2689 = vmatpush1.bf16.msra.mxu1 %v4635_v39  ;;  %2649 = vmatprep.subr.bf16.mxu0 %v4640_v40  ;;  %v4762_v40 = vld [vmem:[%s5592_s23 + $0x228] ss:$12 sps:$4 sm:$0xff]  }
 0x22a   : > { %2690 = vmatprep.subr.bf16.mxu1 %v4643_v41  ;;  %v4764_v41 = vld [vmem:[%s5592_s23 + $0x22c] ss:$12 sps:$4 sm:$0xff]  }
 0x22c   : > { %2650 = vmatpush1.bf16.msra.mxu0 %v4638_v42  ;;  %v4767_v42 = vld [vmem:[%s5592_s23 + $0x214] ss:$12 sps:$4 sm:$0xff]  }
 0x22d   : > { %2691 = vmatpush1.bf16.msra.mxu1 %v4641_v43  ;;  %2651 = vmatprep.subr.bf16.mxu0 %v4646_v44  ;;  %v4707_v43 = vld [vmem:[%s5592_s23 + $0x60] ss:$12 sps:$4 sm:$0xff]  }
 0x22e   : > { %2692 = vmatprep.subr.bf16.mxu1 %v4649_v45  ;;  %v4712_v44 = vld [vmem:[%s5592_s23 + $0x4c] ss:$12 sps:$4 sm:$0xff]   ;;  %v4765_v45 = vld [vmem:[%s5592_s23 + $0x210] ss:$12 sps:$4 sm:$0xff]  }
 0x230   : > { %2652 = vmatpush1.bf16.msra.mxu0 %v4644_v46  ;;  %v4770_v46 = vld [vmem:[%s5592_s23 + $0x1fc] ss:$12 sps:$4 sm:$0xff]  }
 0x231   : > { %2693 = vmatpush1.bf16.msra.mxu1 %v4647_v34  ;;  %2653 = vmatprep.subr.bf16.mxu0 %v4652_v47  ;;  %v4710_v34 = vld [vmem:[%s5592_s23 + $0x48] ss:$12 sps:$4 sm:$0xff]  }
 0x232   : > { %2694 = vmatprep.subr.bf16.mxu1 %v4655_v48  ;;  %v4715_v47 = vld [vmem:[%s5592_s23 + $0x34] ss:$12 sps:$4 sm:$0xff]   ;;  %v4768_v48 = vld [vmem:[%s5592_s23 + $0x1f8] ss:$12 sps:$4 sm:$0xff]  }
 0x234   : > { %2654 = vmatpush2.bf16.msra.mxu0 %v4650_v49  ;;  %v4773_v49 = vld [vmem:[%s5592_s23 + $0x1e4] ss:$12 sps:$4 sm:$0xff]  }
 0x235   : > { %2695 = vmatpush2.bf16.msra.mxu1 %v4653_v50  ;;  %2655 = vmatprep.subr.bf16.mxu0 %v4658_v7  ;;  %v4713_v50 = vld [vmem:[%s5592_s23 + $0x30] ss:$12 sps:$4 sm:$0xff]  }
 0x236   : > { %2696 = vmatprep.subr.bf16.mxu1 %v4661_v51  ;;  %v4718_v7 = vld [vmem:[%s5592_s23 + $0x1c] ss:$12 sps:$4 sm:$0xff]   ;;  %v4771_v51 = vld [vmem:[%s5592_s23 + $0x1e0] ss:$12 sps:$4 sm:$0xff]  }
 0x238   : > { %2656 = vmatpush2.bf16.msra.mxu0 %v4656_v52  ;;  %v4776_v52 = vld [vmem:[%s5592_s23 + $0x1cc] ss:$12 sps:$4 sm:$0xff]  }
 0x239   : > { %2697 = vmatpush2.bf16.msra.mxu1 %v4659_v4  ;;  %2657 = vmatprep.subr.bf16.mxu0 %v4664_v54  ;;  %v4716_v4 = vld [vmem:[%s5592_s23 + $0x18] ss:$12 sps:$4 sm:$0xff]  }
 0x23a   : > { %2698 = vmatprep.subr.bf16.mxu1 %v4667_v56  ;;  %v4721_v54 = vld [vmem:[%s5592_s23 + $0x4] ss:$12 sps:$4 sm:$0xff]   ;;  %v4774_v56 = vld [vmem:[%s5592_s23 + $0x1c8] ss:$12 sps:$4 sm:$0xff]  }
 0x23c   : > { %2658 = vmatpush2.bf16.msra.mxu0 %v4662_v57  ;;  %v4779_v57 = vld [vmem:[%s5592_s23 + $0x1b4] ss:$12 sps:$4 sm:$0xff]  }
 0x23d   : > { %2699 = vmatpush2.bf16.msra.mxu1 %v4665_v58  ;;  %2659 = vmatprep.subr.bf16.mxu0 %v4670_v61  ;;  %v4719_v58 = vld [vmem:[%s5592_s23] ss:$12 sps:$4 sm:$0xff]  }
 0x23e   : > { %2700 = vmatprep.subr.bf16.mxu1 %v4673_v62  ;;  %v4724_v61 = vld [vmem:[%s5592_s23 + $0x16c] ss:$12 sps:$4 sm:$0xff]   ;;  %v4777_v62 = vld [vmem:[%s5592_s23 + $0x1b0] ss:$12 sps:$4 sm:$0xff]  }
 0x240   : > { %2660 = vmatpush2.bf16.msra.mxu0 %v4668_v63  ;;  %v4782_v63 = vld [vmem:[%s5592_s23 + $0x19c] ss:$12 sps:$4 sm:$0xff]  }
 0x241   : > { %2701 = vmatpush2.bf16.msra.mxu1 %v4671_v2  ;;  %2661 = vmatprep.subr.bf16.mxu0 %v4676_v3  ;;  %v4722_v2 = vld [vmem:[%s5592_s23 + $0x168] ss:$12 sps:$4 sm:$0xff]  }
 0x242   : > { %2702 = vmatprep.subr.bf16.mxu1 %v4679_v5  ;;  %v4727_v3 = vld [vmem:[%s5592_s23 + $0x154] ss:$12 sps:$4 sm:$0xff]   ;;  %v4780_v5 = vld [vmem:[%s5592_s23 + $0x198] ss:$12 sps:$4 sm:$0xff]  }
 0x244   : > { %2662 = vmatpush2.bf16.msra.mxu0 %v4674_v60  ;;  %v4785_v60 = vld [vmem:[%s5592_s23 + $0x184] ss:$12 sps:$4 sm:$0xff]  }
 0x245   : > { %2703 = vmatpush2.bf16.msra.mxu1 %v4677_v6  ;;  %2663 = vmatprep.subr.bf16.mxu0 %v4682_v1  ;;  %v4725_v6 = vld [vmem:[%s5592_s23 + $0x150] ss:$12 sps:$4 sm:$0xff]  }
 0x246   : > { %2704 = vmatprep.subr.bf16.mxu1 %v4685_v8  ;;  %v4730_v1 = vld [vmem:[%s5592_s23 + $0x13c] ss:$12 sps:$4 sm:$0xff]   ;;  %v4783_v8 = vld [vmem:[%s5592_s23 + $0x180] ss:$12 sps:$4 sm:$0xff]  }
 0x248   : > { %2664 = vmatpush2.bf16.msra.mxu0 %v4680_v9  ;;  %v4788_v9 = vld [vmem:[%s5592_s23 + $0x2ec] ss:$12 sps:$4 sm:$0xff]  }
 0x249   : > { %2705 = vmatpush2.bf16.msra.mxu1 %v4683_v10  ;;  %2665 = vmatprep.subr.bf16.mxu0 %v4688_v11  ;;  %v4728_v10 = vld [vmem:[%s5592_s23 + $0x138] ss:$12 sps:$4 sm:$0xff]  }
 0x24a   : > { %2706 = vmatprep.subr.bf16.mxu1 %v4691_v12  ;;  %v4733_v11 = vld [vmem:[%s5592_s23 + $0x124] ss:$12 sps:$4 sm:$0xff]   ;;  %v4786_v12 = vld [vmem:[%s5592_s23 + $0x2e8] ss:$12 sps:$4 sm:$0xff]  }
 0x24c   : > { %2666 = vmatpush2.bf16.msra.mxu0 %v4686_v13  ;;  %v4791_v13 = vld [vmem:[%s5592_s23 + $0x2d4] ss:$12 sps:$4 sm:$0xff]  }
 0x24d   : > { %2707 = vmatpush2.bf16.msra.mxu1 %v4689_v14  ;;  %2667 = vmatprep.subr.bf16.mxu0 %v4694_v15  ;;  %v4731_v14 = vld [vmem:[%s5592_s23 + $0x120] ss:$12 sps:$4 sm:$0xff]  }
 0x24e   : > { %2708 = vmatprep.subr.bf16.mxu1 %v4697_v16  ;;  %v4736_v15 = vld [vmem:[%s5592_s23 + $0x10c] ss:$12 sps:$4 sm:$0xff]   ;;  %v4789_v16 = vld [vmem:[%s5592_s23 + $0x2d0] ss:$12 sps:$4 sm:$0xff]  }
 0x250   : > { %2668 = vmatpush2.bf16.msra.mxu0 %v4692_v0  ;;  %v4794_v0 = vld [vmem:[%s5592_s23 + $0x2bc] ss:$12 sps:$4 sm:$0xff]  }
 0x251   : > { %2709 = vmatpush2.bf16.msra.mxu1 %v4695_v59  ;;  %3409 = vmatprep.subr.bf16.mxu0 %v4700_v17  ;;  %v4734_v59 = vld [vmem:[%s5592_s23 + $0x108] ss:$12 sps:$4 sm:$0xff]  }
 0x252   : > { %3450 = vmatprep.subr.bf16.mxu1 %v4764_v41  ;;  %v4739_v17 = vld [vmem:[%s5592_s23 + $0xf4] ss:$12 sps:$4 sm:$0xff]  }
 0x253   : > { %2670 = vmatmul.mubr.bf16.vlgmr.msra.gmra.mxu0 %v5571_v55  ;;  %v5713_v26 = vpop.f32.mrf.mxu0  ;;  %v5716_v19 = vpop.f32.mrf.mxu1 }
 0x254   : > { %2711 = vmatmul.mubr.bf16.vlgmr.msra.gmra.mxu1 %v5568_v53  ;;  %3410 = vmatpush1.bf16.msra.mxu0 %v4698_v22  ;;  %v4704_v53 = vld [vmem:[%s5592_s23 + $0x78] ss:$12 sps:$4 sm:$0xff]   ;;  %v2426_v41 = vadd.f32 %v5713_v26, %v5499_v27  ;;  %v4803_v27 = vld [vmem:[%s5592_s23 + $0x274] ss:$12 sps:$4 sm:$0xff]  }
 0x255   : > { %v5719_v21 = vpop.f32.mrf.mxu0  ;;  %3411 = vmatprep.subr.bf16.mxu0 %v4703_v18  ;;  %v5722_v24 = vpop.f32.mrf.mxu1  ;;  %3451 = vmatpush1.bf16.msra.mxu1 %v4762_v40  ;;  %v4792_v22 = vld [vmem:[%s5592_s23 + $0x2b8] ss:$12 sps:$4 sm:$0xff]   ;;  %v4746_v40 = vld [vmem:[%s5592_s23 + $0x170] ss:$12 sps:$4 sm:$0xff]  }
 0x256   : > { %3452 = vmatprep.subr.bf16.mxu1 %v4767_v42  ;;  %v4797_v18 = vld [vmem:[%s5592_s23 + $0x2a4] ss:$12 sps:$4 sm:$0xff]   ;;  %v2428_v42 = vadd.f32 %v5719_v21, %v5506_v30 }
 0x257   : > { %v2429_v55 = vpop.f32.mrf.mxu0  ;;  %v2470_v25 = vpop.f32.mrf.mxu1 }
 0x258   : > { %3412 = vmatpush1.bf16.msra.mxu0 %v4701_v20  ;;  %v4737_v20 = vld [vmem:[%s5592_s23 + $0xf0] ss:$12 sps:$4 sm:$0xff]   ;;  %v4795_v55 = vld [vmem:[%s5592_s23 + $0x2a0] ss:$12 sps:$4 sm:$0xff]  }
 0x259   : > { %v2430_v28 = vpop.f32.mrf.mxu0  ;;  %3413 = vmatprep.subr.bf16.mxu0 %v4706_v23  ;;  %v2471_v39 = vpop.f32.mrf.mxu1  ;;  %3453 = vmatpush1.bf16.msra.mxu1 %v4765_v45  ;;  %v4742_v23 = vld [vmem:[%s5592_s23 + $0xdc] ss:$12 sps:$4 sm:$0xff]   ;;  %v4800_v25 = vld [vmem:[%s5592_s23 + $0x28c] ss:$12 sps:$4 sm:$0xff]  }
 0x25a   : > { %3454 = vmatprep.subr.bf16.mxu1 %v4770_v46  ;;  %v4745_v28 = vld [vmem:[%s5592_s23 + $0xc4] ss:$12 sps:$4 sm:$0xff]   ;;  %v4743_v39 = vld [vmem:[%s5592_s23 + $0xc0] ss:$12 sps:$4 sm:$0xff]   ;;  %v2469_v46 = vadd.f32 %v5722_v24, %v2428_v42 }
 0x25c   : > { %3414 = vmatpush1.bf16.msra.mxu0 %v4704_v53  ;;  %v4740_v53 = vld [vmem:[%s5592_s23 + $0xd8] ss:$12 sps:$4 sm:$0xff]  }
 0x25d   : > { %3415 = vmatprep.subr.bf16.mxu0 %v4709_v31  ;;  %3455 = vmatpush1.bf16.msra.mxu1 %v4768_v48  ;;  %v4798_v31 = vld [vmem:[%s5592_s23 + $0x288] ss:$12 sps:$4 sm:$0xff]  }
 0x25e   : > { %3456 = vmatprep.subr.bf16.mxu1 %v4773_v49  ;;  %v4801_v49 = vld [vmem:[%s5592_s23 + $0x270] ss:$12 sps:$4 sm:$0xff]  }
 0x260   : > { %3416 = vmatpush1.bf16.msra.mxu0 %v4707_v43  ;;  %v5783_v43 = vld [vmem:[%s5443_s2 + $0x8] sm:$0xf] }
 0x261   : > { %3417 = vmatprep.subr.bf16.mxu0 %v4712_v44  ;;  %3457 = vmatpush1.bf16.msra.mxu1 %v4771_v51  ;;  %v2467_v44 = vadd.f32 %v5716_v19, %v2426_v41  ;;  %v2723_v48 = vrot.slane %v5783_v43, %v5441_v33 }
 0x262   : > { %3458 = vmatprep.subr.bf16.mxu1 %v4776_v52 }
 0x264   : > { %3418 = vmatpush1.bf16.msra.mxu0 %v4710_v34 }
 0x265   : > { %3419 = vmatprep.subr.bf16.mxu0 %v4715_v47  ;;  %3459 = vmatpush1.bf16.msra.mxu1 %v4774_v56  ;;  %v4804_v56 = vld [vmem:[%s5592_s23 + $0x258] ss:$12 sps:$4 sm:$0xff]  }
 0x266   : > { %3460 = vmatprep.subr.bf16.mxu1 %v4779_v57 }
 0x268   : > { %3420 = vmatpush1.bf16.msra.mxu0 %v4713_v50 }
 0x269   : > { %3421 = vmatprep.subr.bf16.mxu0 %v4718_v7  ;;  %3461 = vmatpush1.bf16.msra.mxu1 %v4777_v62  ;;  %v2727_v7 = vrot.slane %v5783_v43, %v5452_v36 }
 0x26a   : > { %3462 = vmatprep.subr.bf16.mxu1 %v4782_v63  ;;  %v4809_v63 = vld [vmem:[%s5592_s23 + $0x244] ss:$12 sps:$4 sm:$0xff]  }
 0x26c   : > { %3422 = vmatpush1.bf16.msra.mxu0 %v4716_v4  ;;  %v4806_v4 = vld [vmem:[%s5592_s23 + $0x25c] ss:$12 sps:$4 sm:$0xff]  }
 0x26d   : > { %3423 = vmatprep.subr.bf16.mxu0 %v4721_v54  ;;  %3463 = vmatpush1.bf16.msra.mxu1 %v4780_v5  ;;  %v4747_v5 = vld [vmem:[%s5592_s23 + $0xb0] ss:$12 sps:$4 sm:$0xff]  }
 0x26e   : > { %3464 = vmatprep.subr.bf16.mxu1 %v4785_v60 }
 0x270   : > { %3424 = vmatpush1.bf16.msra.mxu0 %v4719_v58 }
 0x271   : > { %3425 = vmatprep.subr.bf16.mxu0 %v4724_v61  ;;  %3465 = vmatpush1.bf16.msra.mxu1 %v4783_v8  ;;  %v4749_v8 = vld [vmem:[%s5592_s23 + $0x98] ss:$12 sps:$4 sm:$0xff]  }
 0x272   : > { %3466 = vmatprep.subr.bf16.mxu1 %v4788_v9  ;;  %v4750_v9 = vld [vmem:[%s5592_s23 + $0x140] ss:$12 sps:$4 sm:$0xff]  }
 0x274   : > { %3426 = vmatpush2.bf16.msra.mxu0 %v4722_v2  ;;  %v4807_v2 = vld [vmem:[%s5592_s23 + $0x240] ss:$12 sps:$4 sm:$0xff]  }
 0x275   : > { %3427 = vmatprep.subr.bf16.mxu0 %v4727_v3  ;;  %3467 = vmatpush2.bf16.msra.mxu1 %v4786_v12  ;;  %v4753_v12 = vld [vmem:[%s5592_s23 + $0x68] ss:$12 sps:$4 sm:$0xff]  }
 0x276   : > { %3468 = vmatprep.subr.bf16.mxu1 %v4791_v13  ;;  %v4754_v13 = vld [vmem:[%s5592_s23 + $0x110] ss:$12 sps:$4 sm:$0xff]  }
 0x278   : > { %3428 = vmatpush2.bf16.msra.mxu0 %v4725_v6  ;;  %v4748_v6 = vld [vmem:[%s5592_s23 + $0x158] ss:$12 sps:$4 sm:$0xff]  }
 0x279   : > { %3429 = vmatprep.subr.bf16.mxu0 %v4730_v1  ;;  %3469 = vmatpush2.bf16.msra.mxu1 %v4789_v16  ;;  %v4810_v1 = vld [vmem:[%s5592_s23 + $0x2f0] ss:$12 sps:$4 sm:$0xff]   ;;  %v4757_v16 = vld [vmem:[%s5592_s23 + $0x38] ss:$12 sps:$4 sm:$0xff]  }
 0x27a   : > { %3470 = vmatprep.subr.bf16.mxu1 %v4794_v0  ;;  %v4758_v0 = vld [vmem:[%s5592_s23 + $0xe0] ss:$12 sps:$4 sm:$0xff]  }
 0x27c   : > { %3430 = vmatpush2.bf16.msra.mxu0 %v4728_v10  ;;  %v4751_v10 = vld [vmem:[%s5592_s23 + $0x80] ss:$12 sps:$4 sm:$0xff]  }
 0x27d   : > { %3431 = vmatprep.subr.bf16.mxu0 %v4733_v11  ;;  %3471 = vmatpush2.bf16.msra.mxu1 %v4792_v22  ;;  %v4752_v11 = vld [vmem:[%s5592_s23 + $0x128] ss:$12 sps:$4 sm:$0xff]  }
 0x27e   : > { %3472 = vmatprep.subr.bf16.mxu1 %v4797_v18  ;;  %v4761_v22 = vld [vmem:[%s5592_s23 + $0x8] ss:$12 sps:$4 sm:$0xff]  }
 0x280   : > { %3432 = vmatpush2.bf16.msra.mxu0 %v4731_v14  ;;  %v4755_v14 = vld [vmem:[%s5592_s23 + $0x50] ss:$12 sps:$4 sm:$0xff]  }
 0x281   : > { %3433 = vmatprep.subr.bf16.mxu0 %v4736_v15  ;;  %3473 = vmatpush2.bf16.msra.mxu1 %v4795_v55  ;;  %v4756_v15 = vld [vmem:[%s5592_s23 + $0xf8] ss:$12 sps:$4 sm:$0xff]  }
 0x282   : > { %3474 = vmatprep.subr.bf16.mxu1 %v4800_v25 }
 0x284   : > { %3434 = vmatpush2.bf16.msra.mxu0 %v4734_v59  ;;  %v4759_v59 = vld [vmem:[%s5592_s23 + $0x20] ss:$12 sps:$4 sm:$0xff]  }
 0x285   : > { %3435 = vmatprep.subr.bf16.mxu0 %v4739_v17  ;;  %3475 = vmatpush2.bf16.msra.mxu1 %v4798_v31  ;;  %v4760_v17 = vld [vmem:[%s5592_s23 + $0xc8] ss:$12 sps:$4 sm:$0xff]  }
 0x286   : > { %3476 = vmatprep.subr.bf16.mxu1 %v4803_v27 }
 0x288   : > { %3436 = vmatpush2.bf16.msra.mxu0 %v4737_v20 }
 0x289   : > { %3437 = vmatprep.subr.bf16.mxu0 %v4742_v23  ;;  %3477 = vmatpush2.bf16.msra.mxu1 %v4801_v49 }
 0x28a   : > { %3478 = vmatprep.subr.bf16.mxu1 %v4806_v4  ;;  %v4811_v4 = vld [vmem:[%s5592_s23 + $0x230] ss:$12 sps:$4 sm:$0xff]  }
 0x28c   : > { %3438 = vmatpush2.bf16.msra.mxu0 %v4740_v53 }
 0x28d   : > { %3439 = vmatprep.subr.bf16.mxu0 %v4745_v28  ;;  %3479 = vmatpush2.bf16.msra.mxu1 %v4804_v56  ;;  %v4815_v56 = vld [vmem:[%s5592_s23 + $0x200] ss:$12 sps:$4 sm:$0xff]  }
 0x28e   : > { %3480 = vmatprep.subr.bf16.mxu1 %v4809_v63  ;;  %v4820_v63 = vld [vmem:[%s5592_s23 + $0x278] ss:$12 sps:$4 sm:$0xff]  }
 0x290   : > { %3440 = vmatpush2.bf16.msra.mxu0 %v4743_v39 }
 0x291   : > { %4173 = vmatprep.subr.bf16.mxu0 %v4746_v40  ;;  %3481 = vmatpush2.bf16.msra.mxu1 %v4807_v2  ;;  %v4821_v2 = vld [vmem:[%s5592_s23 + $0x1b8] ss:$12 sps:$4 sm:$0xff]  }
 0x292   : > { %4195 = vmatprep.subr.bf16.mxu1 %v4810_v1 }
 0x293   : > { %v2507_v45 = vpop.f32.mrf.mxu0  ;;  %v2548_v47 = vpop.f32.mrf.mxu1 }
 0x294   : > { %v2508_v34 = vadd.f32 %v2507_v45, %v2467_v44 }
 0x295   : > { %v2509_v26 = vpop.f32.mrf.mxu0  ;;  %v2550_v50 = vpop.f32.mrf.mxu1 }
 0x296   : > { %v2549_v30 = vadd.f32 %v2548_v47, %v2508_v34  ;;  %v2510_v21 = vadd.f32 %v2509_v26, %v2469_v46  ;;  %v2731_v34 = vrot.slane %v5783_v43, %v5449_v35 }
 0x297   : > { %v2511_v19 = vpop.f32.mrf.mxu0  ;;  %v2552_v52 = vpop.f32.mrf.mxu1 }
 0x298   : > { %v2740_v24 = vadd.f32 %v2723_v48, %v2549_v30  ;;  %v2551_v51 = vadd.f32 %v2550_v50, %v2510_v21 }
 0x299   : > { %v2512_v54 = vpop.f32.mrf.mxu0  ;;  %v2553_v58 = vpop.f32.mrf.mxu1 }
 0x29a   : > { %v2741_v57 = vadd.f32 %v2727_v7, %v2551_v51  ;;  %v2744_v61 = vmax.f32 %v2740_v24, 0.0  ;;  %v4817_v58 = vld [vmem:[%s5592_s23 + $0x1e8] ss:$12 sps:$4 sm:$0xff]  }
 0x29c   : > { %v2745_v62 = vmax.f32 %v2741_v57, 0.0  ;;  %v2749_v60 = vpack.c.bf16 %v2744_v61, %v2744_v61  ;;  %v4816_v57 = vld [vmem:[%s5592_s23 + $0x2a8] ss:$12 sps:$4 sm:$0xff]   ;;  %v4818_v61 = vld [vmem:[%s5592_s23 + $0x290] ss:$12 sps:$4 sm:$0xff]  }
 0x29e   : > { %v2750_v3 = vpack.c.bf16 %v2745_v62, %v2745_v62  ;;  %v4819_v62 = vld [vmem:[%s5592_s23 + $0x1d0] ss:$12 sps:$4 sm:$0xff]  }
 0x2a0   : > { %3441 = vmatprep.mubr.bf16.mxu0 %v2750_v3 }
 0x2a1   : > { %3442 = vmatmul.mubr.bf16.vlgmr.msra.gmra.mxu0 %v2749_v60 }
 0x2a2   : > { %4174 = vmatpush3.bf16.msra.mxu0 %v4747_v5  ;;  %3523 = vmatprep.mubr.bf16.mxu0 %v2750_v3  ;;  %v4822_v3 = vld [vmem:[%s5592_s23 + $0x260] ss:$12 sps:$4 sm:$0xff]  }
 0x2a3   : > { %4175 = vmatprep.subr.bf16.mxu0 %v4748_v6  ;;  %v4823_v5 = vld [vmem:[%s5592_s23 + $0x1a0] ss:$12 sps:$4 sm:$0xff]   ;;  %v4825_v6 = vld [vmem:[%s5592_s23 + $0x188] ss:$12 sps:$4 sm:$0xff]  }
 0x2a6   : > { %4176 = vmatpush3.bf16.msra.mxu0 %v4749_v8 }
 0x2a7   : > { %4177 = vmatprep.subr.bf16.mxu0 %v4750_v9 }
 0x2aa   : > { %4178 = vmatpush3.bf16.msra.mxu0 %v4751_v10 }
 0x2ab   : > { %4179 = vmatprep.subr.bf16.mxu0 %v4752_v11 }
 0x2ae   : > { %4180 = vmatpush3.bf16.msra.mxu0 %v4753_v12 }
 0x2af   : > { %4181 = vmatprep.subr.bf16.mxu0 %v4754_v13 }
 0x2b2   : > { %4182 = vmatpush3.bf16.msra.mxu0 %v4755_v14 }
 0x2b3   : > { %4183 = vmatprep.subr.bf16.mxu0 %v4756_v15 }
 0x2b6   : > { %4184 = vmatpush3.bf16.msra.mxu0 %v4757_v16  ;;  %v2748_v16 = vld [vmem:[%s5443_s2 + $0xc] sm:$0x7] }
 0x2b7   : > { %4185 = vmatprep.subr.bf16.mxu0 %v4758_v0  ;;  %v2885_v0 = vrot.slane %v2748_v16, %v5441_v33 }
 0x2ba   : > { %4186 = vmatpush3.bf16.msra.mxu0 %v4759_v59  ;;  %v2889_v59 = vrot.slane %v2748_v16, %v5452_v36 }
 0x2bb   : > { %4187 = vmatprep.subr.bf16.mxu0 %v4760_v17 }
 0x2be   : > { %4188 = vmatpush3.bf16.msra.mxu0 %v4761_v22 }
 0x2c1   : > { %3524 = vmatmul.mubr.bf16.vlgmr.msra.gmra.mxu0 %v2749_v60  ;;  %v4824_v60 = vld [vmem:[%s5592_s23 + $0x248] ss:$12 sps:$4 sm:$0xff]  }
 0x2d3   : > { %v2589_v18 = vpop.f32.mrf.mxu0 }
 0x2d4   : > { %v2630_v20 = vpop.f32.mrf.mxu1  ;;  %v2590_v39 = vadd.f32 %v2589_v18, %v5503_v29  ;;  %v2735_v29 = vrot.slane %v5783_v43, %v493_v37  ;;  %v4813_v37 = vld [vmem:[%s5592_s23 + $0x218] ss:$12 sps:$4 sm:$0xff]   ;;  %v4814_v43 = vld [vmem:[%s5592_s23 + $0x2c0] ss:$12 sps:$4 sm:$0xff]  }
 0x2d5   : > { %v2591_v23 = vpop.f32.mrf.mxu0  ;;  %v3574_v18 = vld [vmem:[%s5443_s2 + $0xf] sm:$0x7] }
 0x2d6   : > { %v2632_v55 = vpop.f32.mrf.mxu1  ;;  %v2592_v40 = vadd.f32 %v2591_v23, %v5509_v38  ;;  %v2631_v41 = vadd.f32 %v2630_v20, %v2590_v39 }
 0x2d7   : > { %v2593_v25 = vpop.f32.mrf.mxu0 }
 0x2d8   : > { %v2634_v53 = vpop.f32.mrf.mxu1  ;;  %v2633_v44 = vadd.f32 %v2632_v55, %v2592_v40 }
 0x2d9   : > { %v2594_v28 = vpop.f32.mrf.mxu0  ;;  %v3580_v53 = vrot.slane %v3574_v18, %v5441_v33 }
 0x2da   : > { %v2635_v31 = vpop.f32.mrf.mxu1 }
 0x2db   : > { %v3584_v31 = vrot.slane %v3574_v18, %v5452_v36 }
 0x313   : > { %v2671_v42 = vpop.f32.mrf.mxu0 }
 0x314   : > { %v2672_v45 = vadd.f32 %v2671_v42, %v2631_v41  ;;  %v2712_v46 = vpop.f32.mrf.mxu1 }
 0x315   : > { %v2673_v47 = vpop.f32.mrf.mxu0 }
 0x316   : > { %v2713_v48 = vadd.f32 %v2712_v46, %v2672_v45  ;;  %v2674_v27 = vadd.f32 %v2673_v47, %v2633_v44  ;;  %v2714_v26 = vpop.f32.mrf.mxu1  ;;  %v2893_v46 = vrot.slane %v2748_v16, %v5449_v35 }
 0x317   : > { %v2675_v49 = vpop.f32.mrf.mxu0 }
 0x318   : > { %v2742_v38 = vadd.f32 %v2731_v34, %v2713_v48  ;;  %v2715_v30 = vadd.f32 %v2714_v26, %v2674_v27  ;;  %v2716_v21 = vpop.f32.mrf.mxu1 }
 0x319   : > { %v2676_v50 = vpop.f32.mrf.mxu0  ;;  %v4167_v21 = vld [vmem:[%s5443_s2 + $0x12] ss:$0 sm:$0xff] }
 0x31a   : > { %v2743_v7 = vadd.f32 %v2735_v29, %v2715_v30  ;;  %v2717_v19 = vpop.f32.mrf.mxu1  ;;  %v2746_v24 = vmax.f32 %v2742_v38, 0.0  ;;  %v3588_v29 = vrot.slane %v3574_v18, %v5449_v35 }
 0x31c   : > { %v2747_v51 = vmax.f32 %v2743_v7, 0.0  ;;  %v2751_v54 = vpack.c.bf16 %v2746_v24, %v2746_v24 }
 0x31e   : > { %v2752_v52 = vpack.c.bf16 %v2747_v51, %v2747_v51 }
 0x320   : > { %3482 = vmatprep.mubr.bf16.mxu1 %v2752_v52 }
 0x321   : > { %3483 = vmatmul.mubr.bf16.vlgmr.msra.gmra.mxu1 %v2751_v54 }
 0x322   : > { %4196 = vmatpush3.bf16.msra.mxu1 %v4811_v4  ;;  %3563 = vmatprep.mubr.bf16.mxu1 %v2752_v52 }
 0x323   : > { %4197 = vmatprep.subr.bf16.mxu1 %v4812_v32 }
 0x326   : > { %4198 = vmatpush3.bf16.msra.mxu1 %v4813_v37 }
 0x327   : > { %4199 = vmatprep.subr.bf16.mxu1 %v4814_v43 }
 0x32a   : > { %4200 = vmatpush3.bf16.msra.mxu1 %v4815_v56 }
 0x32b   : > { %4201 = vmatprep.subr.bf16.mxu1 %v4816_v57 }
 0x32e   : > { %4202 = vmatpush3.bf16.msra.mxu1 %v4817_v58 }
 0x32f   : > { %4203 = vmatprep.subr.bf16.mxu1 %v4818_v61 }
 0x332   : > { %4204 = vmatpush3.bf16.msra.mxu1 %v4819_v62 }
 0x333   : > { %4205 = vmatprep.subr.bf16.mxu1 %v4820_v63 }
 0x336   : > { %4206 = vmatpush3.bf16.msra.mxu1 %v4821_v2 }
 0x337   : > { %4207 = vmatprep.subr.bf16.mxu1 %v4822_v3 }
 0x33a   : > { %4208 = vmatpush3.bf16.msra.mxu1 %v4823_v5 }
 0x33b   : > { %4209 = vmatprep.subr.bf16.mxu1 %v4824_v60 }
 0x33e   : > { %4210 = vmatpush3.bf16.msra.mxu1 %v4825_v6 }
 0x341   : > { %3564 = vmatmul.mubr.bf16.vlgmr.msra.gmra.mxu1 %v2751_v54 }
 0x361   : > { %v3443_v1 = vpop.f32.mrf.mxu0 }
 0x362   : > { %v3444_v17 = vadd.f32 %v3443_v1, %v2885_v0 }
 0x363   : > { %v3445_v8 = vpop.f32.mrf.mxu0 }
 0x364   : > { %v3446_v20 = vadd.f32 %v3445_v8, %v2889_v59 }
 0x365   : > { %v3447_v9 = vpop.f32.mrf.mxu0 }
 0x367   : > { %v3448_v10 = vpop.f32.mrf.mxu0 }
 0x381   : > { %v4189_v11 = vpop.f32.mrf.mxu0 }
 0x383   : > { %v4190_v12 = vpop.f32.mrf.mxu0 }
 0x384   : > { %v4191_v13 = vadd.f32 %v4190_v12, %v4189_v11 }
 0x385   : > { %v4192_v14 = vpop.f32.mrf.mxu0 }
 0x386   : > { %v3526_v48 = vadd.f32 %v4191_v13, %v2893_v46 }
 0x387   : > { %v4193_v15 = vpop.f32.mrf.mxu0 }
 0x3e1   : > { %v3484_v22 = vpop.f32.mrf.mxu1 }
 0x3e2   : > { %v3485_v23 = vadd.f32 %v3484_v22, %v3444_v17 }
 0x3e3   : > { %v3486_v55 = vpop.f32.mrf.mxu1 }
 0x3e4   : > { %v3571_v25 = vmax.f32 %v3485_v23, 0.0  ;;  %v3487_v28 = vadd.f32 %v3486_v55, %v3446_v20 }
 0x3e5   : > { %v3488_v39 = vpop.f32.mrf.mxu1 }
 0x3e6   : > { %v3572_v40 = vmax.f32 %v3487_v28, 0.0  ;;  %v3592_v42 = vmul.f32 %v3580_v53, %v3571_v25 }
 0x3e7   : > { %v3489_v41 = vpop.f32.mrf.mxu1 }
 0x3e8   : > { %v3593_v44 = vmul.f32 %v3584_v31, %v3572_v40 }
 0x3ea   : > { %v3595_v45 = vadd.f32 %v3593_v44, %v3592_v42 }
 0x401   : > { %v4211_v34 = vpop.f32.mrf.mxu1 }
 0x403   : > { %v4212_v47 = vpop.f32.mrf.mxu1 }
 0x404   : > { %v4213_v27 = vadd.f32 %v4212_v47, %v4211_v34 }
 0x405   : > { %v4214_v26 = vpop.f32.mrf.mxu1 }
 0x406   : > { %v3566_v33 = vadd.f32 %v4213_v27, %v3526_v48 }
 0x407   : > { %v4215_v36 = vpop.f32.mrf.mxu1 }
 0x408   : > { %v3573_v49 = vmax.f32 %v3566_v33, 0.0 }
 0x40a   : > { %v3594_v38 = vmul.f32 %v3588_v29, %v3573_v49 }
 0x40c   : > { %v3596_v30 = vadd.f32 %v3595_v45, %v3594_v38 }
 0x40e   : > { %3597 = vadd.xlane.f32.xlu0 %v3596_v30 }
 0x497   : > { %v3598_v50 = vpop.xlane.xlu0 %3597 }
 0x498   : > { %v3605_v7 = vadd.f32 %v4167_v21, %v3598_v50 }
 0x49a   : > { %3607 = vst.msk [vmem:[%s463_s0] sm:$0xff] %vm3606_vm3, %v3605_v7 }
 0x49b PF: > { %s5897_s13 = sld [smem:[#allocation14_spill]]  ;;  %p16_p4 = scmp.ge.s32.totalorder %s5138_s29, 7  }
 0x49c   : > { %s5898_s24 = smov %s5052_s25  ;;  %s5899_s25 = smov %s5056_s26 }
 0x49d   : > { %s5901_s27 = smov %s5138_s29  ;;  %18 = sbr.rel (!%p16_p4) target bundleno = 7 (0x7), region = 139 }
 0x4a1   : > { %s5900_s26 = smov %s5897_s13 }
 0x4a2   :  { %3627 = vsyncpa [#allocation3], 1 }
 0x4a3   :  { %3629 = vsyncpa [#allocation3 + $0x1], 1 }
 0x4a4   :  { %3630 = vsyncpa [#allocation5], 1 }

</bundles_post_ra>
